<compile_context>
chip_gen: v5e
topology: v5e:2x2
jax: 0.10.0
libtpu: 0.0.40
codegen_flags: <defaults>
</compile_context>

<pallas_src>
import functools

import jax
import jax.numpy as jnp
from jax.experimental import pallas as pl
from jax.experimental.pallas import tpu as pltpu


NUM_CLASSES = 5
C_FEAT = 32        # backbone "num_features"
LANE = 128


def _round_up(x, m):
    return (x + m - 1) // m * m


# ----------------------------------------------------------------------------
# Fused kernel (one batch tile per grid step):
#   im2col-conv (single K=9*Cin dot) + bias + ReLU -> global avg pool
#   -> linear head -> masked softmax.
# ----------------------------------------------------------------------------
def _fused_forward_kernel(x_ref, wconv_ref, bconv_ref, whead_ref, bhead_ref,
                          out_ref, *, tb, hw, num_classes):
    # x_ref:     (TB, HW, K_PAD)       bf16  lane-dense im2col patches
    # wconv_ref: (K_PAD, COUT_PAD)     bf16  conv weights (zero-padded K / C)
    # bconv_ref: (1, COUT_PAD)         f32
    # whead_ref: (COUT_PAD, NC_PAD)    bf16  zero-padded rows/cols
    # bhead_ref: (1, NC_PAD)           f32
    # out_ref:   (TB, NC_PAD)          f32   softmax probs (padded lanes ~0)
    kp = x_ref.shape[-1]
    cout_pad = wconv_ref.shape[-1]

    # --- 3x3 "same" conv as ONE MXU dot over K = 9*Cin (padded), f32 accum ---
    x2d = x_ref[...].reshape(tb * hw, kp)                       # layout-preserving
    conv = jnp.dot(x2d, wconv_ref[...],
                   preferred_element_type=jnp.float32)           # (TB*HW, COUT_PAD)
    feat = jnp.maximum(conv + bconv_ref[...], 0.0)               # bias + ReLU

    # --- AdaptiveAvgPool2d((1,1)) per image ---
    feat3 = feat.reshape(tb, hw, cout_pad)
    pooled = jnp.sum(feat3, axis=1) * (1.0 / hw)                 # (TB, COUT_PAD) f32

    # TODO(synk): dropout is nn.Identity in eval / dropout == 0 -> no-op here.

    # --- linear head (bf16 operands, f32 accum) + masked softmax ---
    logits = jnp.dot(pooled.astype(jnp.bfloat16), whead_ref[...],
                     preferred_element_type=jnp.float32) + bhead_ref[...]
    lane_id = jax.lax.broadcasted_iota(jnp.int32, logits.shape, dimension=1)
    logits = jnp.where(lane_id < num_classes, logits, -1e30)
    m = jnp.max(logits, axis=-1, keepdims=True)
    e = jnp.exp(logits - m)
    out_ref[...] = e / jnp.sum(e, axis=-1, keepdims=True)


# ----------------------------------------------------------------------------
# Wrapper: lane-dense im2col layout prep + one pallas_call over batch tiles.
# ----------------------------------------------------------------------------
def pretrained_model_forward(x_nchw, params, *, tb=8):
    """PretrainedModel.forward: conv3x3+ReLU backbone -> avgpool -> head -> softmax."""
    B, Cin, H, W = x_nchw.shape
    cout = params["conv_w"].shape[-1]
    nc = params["head_w"].shape[-1]
    hw = H * W
    k = 9 * Cin
    kp = _round_up(k, LANE)
    cout_pad = _round_up(cout, LANE)
    nc_pad = _round_up(nc, LANE)

    tb = min(tb, B)
    b_pad = _round_up(B, tb)

    # im2col in the wrapper: tap-major / channel-minor, last dim padded to 128
    # lanes so the kernel input tile, VMEM buffer and every vreg are lane-dense.
    x_nhwc = jnp.transpose(x_nchw, (0, 2, 3, 1))
    xq = jnp.pad(x_nhwc, ((0, 0), (1, 1), (1, 1), (0, 0)))
    taps = [xq[:, di:di + H, dj:dj + W, :] for di in range(3) for dj in range(3)]
    patches = jnp.concatenate(taps, axis=-1).reshape(B, hw, k)
    patches = jnp.pad(patches, ((0, b_pad - B), (0, 0), (0, kp - k)))
    patches = patches.astype(jnp.bfloat16)

    # Conv weights are stored (9*Cin, Cout) in the same tap-major order.
    wconv = jnp.pad(params["conv_w"],
                    ((0, kp - k), (0, cout_pad - cout))).astype(jnp.bfloat16)
    bconv = jnp.pad(params["conv_b"], (0, cout_pad - cout))
    bconv = bconv.reshape(1, cout_pad).astype(jnp.float32)

    whead = jnp.pad(params["head_w"],
                    ((0, cout_pad - cout), (0, nc_pad - nc))).astype(jnp.bfloat16)
    bhead = jnp.pad(params["head_b"], (0, nc_pad - nc))
    bhead = bhead.reshape(1, nc_pad).astype(jnp.float32)

    kernel = functools.partial(_fused_forward_kernel,
                               tb=tb, hw=hw, num_classes=nc)

    probs_pad = pl.pallas_call(
        kernel,
        out_shape=jax.ShapeDtypeStruct((b_pad, nc_pad), jnp.float32),
        grid_spec=pltpu.PrefetchScalarGridSpec(
            num_scalar_prefetch=0,
            grid=(b_pad // tb,),
            in_specs=[
                pl.BlockSpec((tb, hw, kp), lambda b: (b, 0, 0)),
                pl.BlockSpec((kp, cout_pad), lambda b: (0, 0)),
                pl.BlockSpec((1, cout_pad), lambda b: (0, 0)),
                pl.BlockSpec((cout_pad, nc_pad), lambda b: (0, 0)),
                pl.BlockSpec((1, nc_pad), lambda b: (0, 0)),
            ],
            out_specs=pl.BlockSpec((tb, nc_pad), lambda b: (b, 0)),
        ),
        compiler_params=pltpu.CompilerParams(
            dimension_semantics=("parallel",)),
    )(patches, wconv, bconv, whead, bhead)

    return probs_pad[:B, :nc]


# ----------------------------------------------------------------------------
# Params + pure-JAX reference (same bf16-operand / f32-accumulate semantics)
# ----------------------------------------------------------------------------
def init_params(key, cin=3, cfeat=C_FEAT, num_classes=NUM_CLASSES):
    k1, k2, k3, k4 = jax.random.split(key, 4)
    conv_w = jax.random.normal(k1, (9 * cin, cfeat), jnp.float32) * 0.1
    conv_b = jax.random.normal(k2, (cfeat,), jnp.float32) * 0.01
    head_w = jax.random.normal(k3, (cfeat, num_classes), jnp.float32) * 0.1
    head_b = jax.random.normal(k4, (num_classes,), jnp.float32) * 0.01
    return {"conv_w": conv_w, "conv_b": conv_b,
            "head_w": head_w, "head_b": head_b}


def _reference_forward(x_nchw, params):
    B, Cin, H, W = x_nchw.shape
    x_nhwc = jnp.transpose(x_nchw, (0, 2, 3, 1))
    xq = jnp.pad(x_nhwc, ((0, 0), (1, 1), (1, 1), (0, 0)))
    taps = [xq[:, di:di + H, dj:dj + W, :] for di in range(3) for dj in range(3)]
    p = jnp.concatenate(taps, axis=-1).reshape(B, H * W, 9 * Cin)
    p = p.astype(jnp.bfloat16).astype(jnp.float32)               # match kernel inputs
    wq = params["conv_w"].astype(jnp.bfloat16).astype(jnp.float32)
    feats = jnp.maximum(jnp.einsum("bpk,kc->bpc", p, wq) + params["conv_b"], 0.0)
    pooled = feats.mean(axis=1)
    wh = params["head_w"].astype(jnp.bfloat16).astype(jnp.float32)
    logits = pooled.astype(jnp.bfloat16).astype(jnp.float32) @ wh + params["head_b"]
    return jax.nn.softmax(logits, axis=-1)


if __name__ == "__main__":
    key = jax.random.PRNGKey(0)
    kx, kparams = jax.random.split(key)

    # Small NCHW input like (B, 3, H, W); B=16 -> two parallel grid steps (TB=8).
    B, Cin, H, W = 16, 3, 16, 16
    x = jax.random.normal(kx, (B, Cin, H, W), jnp.float32)
    params = init_params(kparams, cin=Cin, cfeat=C_FEAT, num_classes=NUM_CLASSES)

    fwd = jax.jit(functools.partial(pretrained_model_forward, tb=8))
    out = jax.block_until_ready(fwd(x, params))

    ref = _reference_forward(x, params)
    assert out.shape == (B, NUM_CLASSES)
    assert jnp.allclose(jnp.sum(out, axis=-1), 1.0, atol=1e-5)
    assert jnp.allclose(out, ref, atol=2e-3, rtol=2e-3), float(jnp.max(jnp.abs(out - ref)))

    print("KERNEL_OK")
</pallas_src>

<mosaic_0001>
module attributes {stable_mosaic.version = 11 : i64} {
  func.func @_fused_forward_kernel(%arg0: i32, %arg1: memref<8x256x128xbf16, #tpu.memory_space<vmem>>, %arg2: memref<128x128xbf16, #tpu.memory_space<vmem>>, %arg3: memref<1x128xf32, #tpu.memory_space<vmem>>, %arg4: memref<128x128xbf16, #tpu.memory_space<vmem>>, %arg5: memref<1x128xf32, #tpu.memory_space<vmem>>, %arg6: memref<8x128xf32, #tpu.memory_space<vmem>>) attributes {dimension_semantics = [#tpu.dimension_semantics<parallel>], iteration_bounds = array<i64: 2>, scalar_prefetch = 0 : i64, scratch_operands = 0 : i64, tpu.core_type = #tpu.core_type<tc>, window_params = [{transform_indices = @transform_0, window_bounds = array<i64: 8, 256, 128>}, {pipeline_mode = #tpu.pipeline_mode<synchronous>, transform_indices = @transform_1, window_bounds = array<i64: 128, 128>}, {pipeline_mode = #tpu.pipeline_mode<synchronous>, transform_indices = @transform_2, window_bounds = array<i64: 1, 128>}, {pipeline_mode = #tpu.pipeline_mode<synchronous>, transform_indices = @transform_3, window_bounds = array<i64: 128, 128>}, {pipeline_mode = #tpu.pipeline_mode<synchronous>, transform_indices = @transform_4, window_bounds = array<i64: 1, 128>}, {transform_indices = @transform_5, window_bounds = array<i64: 8, 128>}]} {
    %c0 = arith.constant 0 : index
    %c0_0 = arith.constant 0 : index
    %c0_1 = arith.constant 0 : index
    %0 = vector.load %arg1[%c0, %c0_0, %c0_1] : memref<8x256x128xbf16, #tpu.memory_space<vmem>>, vector<8x256x128xbf16>
    %1 = vector.shape_cast %0 : vector<8x256x128xbf16> to vector<2048x128xbf16>
    %c0_2 = arith.constant 0 : index
    %c0_3 = arith.constant 0 : index
    %2 = vector.load %arg2[%c0_2, %c0_3] : memref<128x128xbf16, #tpu.memory_space<vmem>>, vector<128x128xbf16>
    %cst = arith.constant dense<0.000000e+00> : vector<2048x128xf32>
    %3 = tpu.matmul %1, %2, %cst {dimension_numbers = #tpu.dot_dimension_numbers<[1], [0], [0], [1], [0, 0, 1, 1], [], []>} : vector<2048x128xbf16>, vector<128x128xbf16>, vector<2048x128xf32> -> vector<2048x128xf32>
    %c0_4 = arith.constant 0 : index
    %c0_5 = arith.constant 0 : index
    %4 = vector.load %arg3[%c0_4, %c0_5] : memref<1x128xf32, #tpu.memory_space<vmem>>, vector<1x128xf32>
    %5 = vector.broadcast %4 : vector<1x128xf32> to vector<2048x128xf32>
    %6 = arith.addf %3, %5 : vector<2048x128xf32>
    %cst_6 = arith.constant 0.000000e+00 : f32
    %7 = vector.broadcast %cst_6 : f32 to vector<2048x128xf32>
    %8 = arith.maximumf %6, %7 : vector<2048x128xf32>
    %9 = vector.shape_cast %8 : vector<2048x128xf32> to vector<8x256x128xf32>
    %cst_7 = arith.constant dense<0.000000e+00> : vector<8x128xf32>
    %10 = vector.multi_reduction <add>, %9, %cst_7 [1] : vector<8x256x128xf32> to vector<8x128xf32>
    %cst_8 = arith.constant 3.906250e-03 : f32
    %11 = vector.broadcast %cst_8 : f32 to vector<8x128xf32>
    %12 = arith.mulf %10, %11 : vector<8x128xf32>
    %13 = arith.truncf %12 : vector<8x128xf32> to vector<8x128xbf16>
    %c0_9 = arith.constant 0 : index
    %c0_10 = arith.constant 0 : index
    %14 = vector.load %arg4[%c0_9, %c0_10] : memref<128x128xbf16, #tpu.memory_space<vmem>>, vector<128x128xbf16>
    %cst_11 = arith.constant dense<0.000000e+00> : vector<8x128xf32>
    %15 = tpu.matmul %13, %14, %cst_11 {dimension_numbers = #tpu.dot_dimension_numbers<[1], [0], [0], [1], [0, 0, 1, 1], [], []>} : vector<8x128xbf16>, vector<128x128xbf16>, vector<8x128xf32> -> vector<8x128xf32>
    %c0_12 = arith.constant 0 : index
    %c0_13 = arith.constant 0 : index
    %16 = vector.load %arg5[%c0_12, %c0_13] : memref<1x128xf32, #tpu.memory_space<vmem>>, vector<1x128xf32>
    %17 = vector.broadcast %16 : vector<1x128xf32> to vector<8x128xf32>
    %18 = arith.addf %15, %17 : vector<8x128xf32>
    %19 = tpu.iota {dimensions = array<i32: 1>} : vector<8x128xi32>
    %c5_i32 = arith.constant 5 : i32
    %20 = vector.broadcast %c5_i32 : i32 to vector<8x128xi32>
    %21 = arith.cmpi slt, %19, %20 : vector<8x128xi32>
    %cst_14 = arith.constant -1.000000e+30 : f32
    %22 = vector.broadcast %cst_14 : f32 to vector<8x128xf32>
    %23 = arith.select %21, %18, %22 : vector<8x128xi1>, vector<8x128xf32>
    %cst_15 = arith.constant dense<0xFF800000> : vector<8xf32>
    %24 = vector.multi_reduction <maximumf>, %23, %cst_15 [1] : vector<8x128xf32> to vector<8xf32>
    %25 = vector.shape_cast %24 : vector<8xf32> to vector<8x1xf32>
    %26 = vector.broadcast %25 : vector<8x1xf32> to vector<8x128xf32>
    %27 = arith.subf %23, %26 : vector<8x128xf32>
    %28 = math.exp %27 : vector<8x128xf32>
    %cst_16 = arith.constant dense<0.000000e+00> : vector<8xf32>
    %29 = vector.multi_reduction <add>, %28, %cst_16 [1] : vector<8x128xf32> to vector<8xf32>
    %30 = vector.shape_cast %29 : vector<8xf32> to vector<8x1xf32>
    %31 = vector.broadcast %30 : vector<8x1xf32> to vector<8x128xf32>
    %32 = arith.divf %28, %31 : vector<8x128xf32>
    %c0_17 = arith.constant 0 : index
    %c0_18 = arith.constant 0 : index
    %33 = vector.load %arg6[%c0_17, %c0_18] : memref<8x128xf32, #tpu.memory_space<vmem>>, vector<8x128xf32>
    tpu.vector_store %arg6[%c0_17, %c0_18], %32 {strides = array<i32>} : memref<8x128xf32, #tpu.memory_space<vmem>>, vector<8x128xf32>,
    return
  }
  func.func @transform_0(%arg0: i32) -> (i32, i32, i32) {
    %c0_i32 = arith.constant 0 : i32
    %c0_i32_0 = arith.constant 0 : i32
    %c0_i32_1 = arith.constant 0 : i32
    return %arg0, %c0_i32, %c0_i32_0 : i32, i32, i32
  }
  func.func @transform_1(%arg0: i32) -> (i32, i32) {
    %c0_i32 = arith.constant 0 : i32
    %c0_i32_0 = arith.constant 0 : i32
    %c0_i32_1 = arith.constant 0 : i32
    return %c0_i32, %c0_i32_0 : i32, i32
  }
  func.func @transform_2(%arg0: i32) -> (i32, i32) {
    %c0_i32 = arith.constant 0 : i32
    %c0_i32_0 = arith.constant 0 : i32
    %c0_i32_1 = arith.constant 0 : i32
    return %c0_i32, %c0_i32_0 : i32, i32
  }
  func.func @transform_3(%arg0: i32) -> (i32, i32) {
    %c0_i32 = arith.constant 0 : i32
    %c0_i32_0 = arith.constant 0 : i32
    %c0_i32_1 = arith.constant 0 : i32
    return %c0_i32, %c0_i32_0 : i32, i32
  }
  func.func @transform_4(%arg0: i32) -> (i32, i32) {
    %c0_i32 = arith.constant 0 : i32
    %c0_i32_0 = arith.constant 0 : i32
    %c0_i32_1 = arith.constant 0 : i32
    return %c0_i32, %c0_i32_0 : i32, i32
  }
  func.func @transform_5(%arg0: i32) -> (i32, i32) {
    %c0_i32 = arith.constant 0 : i32
    %c0_i32_0 = arith.constant 0 : i32
    return %arg0, %c0_i32 : i32, i32
  }
}

</mosaic_0001>

<bundles_post_ra>
// kernel: pretrained_model_forward.1
= control target key start
LH: loop header
LB: loop body
LE: loop exit
PB: predicated region body
PF: predicated region fallthrough
CT: control target
= control target key end

     0   :  { %s3540_s18 = smov 0   ;;  %s4137_s0 = inlined_call_operand.vmem [shape: bf16[16,256,128], index: 0, kind: input, shape index: {}]   ;;  %s4138_s1 = inlined_call_operand.vmem [shape: bf16[128,128], index: 1, kind: input, shape index: {}]   ;;  %s4139_s2 = inlined_call_operand.vmem [shape: f32[1,128], index: 2, kind: input, shape index: {}]   ;;  %s4140_s3 = inlined_call_operand.vmem [shape: bf16[128,128], index: 3, kind: input, shape index: {}]   ;;  %s4141_s4 = inlined_call_operand.vmem [shape: f32[1,128], index: 4, kind: input, shape index: {}]   ;;  %s4142_s5 = inlined_call_operand.vmem [shape: f32[16,128], index: 5, kind: output, shape index: {}]  }
   0x1 LB: > { %s3546_s19 = sadd.s32 4294967295, %s3508_s18   ;;  %p2734_p0 = scmp.ge.s32.totalorder %s3508_s18, 1  ;;  %s3508_s18 = sphi %s3540_s18, %s15_s18  }
   0x2   : > { %p189_p1 = scmp.lt.s32.totalorder %s3508_s18, 3 }
   0x4   : > { %p190_p2 = pnand %p2734_p0, %p189_p1 }
   0x5   : > { %s2735_s28 = sshll.u32 (!%p190_p2), %s3546_s19, 3  ;;  %p224_p4 = scmp.lt.s32.totalorder (!%p190_p2), %s3546_s19, 1 }
   0x6   : > { %193 = sbr.rel (%p190_p2) target bundleno = 1121 (0x461), region = 40  ;;  %p218_p3 = scmp.lt.s32.totalorder (!%p190_p2), %s2735_s28, 15 }
   0xb   : > { %v3453_v0 = vld [vmem:[%s4138_s1 + $0x38] sm:$0xff]  ;;  %v3452_v1 = vld [vmem:[%s4138_s1 + $0x30] sm:$0xff]  ;;  %v3451_v2 = vld [vmem:[%s4138_s1 + $0x28] sm:$0xff]  ;;  %s4144_s28 = smov (!%p218_p3, %s2735_s28), 15  ;;  %vm2573_vm0 = vcmask 1041409   ;;  %vm2575_vm1 = vcmask 1042434  }
   0xc   : > { %1320 = vmatpush.bf16.msra.mxu0 %v3453_v0  ;;  %3462 = vmatpush.bf16.msra.mxu1 %v3453_v0  ;;  %v3450_v3 = vld [vmem:[%s4138_s1 + $0x20] sm:$0xff]  ;;  %v3449_v4 = vld [vmem:[%s4138_s1 + $0x18] sm:$0xff]  ;;  %v3448_v5 = vld [vmem:[%s4138_s1 + $0x10] sm:$0xff]  ;;  %s3317_s10 = sshll.u32 %s4144_s28, 7  ;;  %vm2577_vm2 = vcmask 1043459   ;;  %vm2579_vm3 = vcmask 1044484  }
   0xd   : > { %3463 = vmatpush.bf16.msra.mxu2 %v3453_v0  ;;  %3464 = vmatpush.bf16.msra.mxu3 %v3453_v0  ;;  %v3447_v6 = vld [vmem:[%s4138_s1 + $0x8] sm:$0xff]  ;;  %v3446_v7 = vld [vmem:[%s4138_s1] sm:$0xff]  ;;  %s3578_s15 = scalar_lea.vmem %s4137_s0, %s3317_s10  ;;  %vm2581_vm4 = vcmask 1045509   ;;  %vm2583_vm5 = vcmask 1046534   ;;  %vm2585_vm6 = vcmask 1047559   ;;  %s4146_s19 = smov (!%p224_p4, %s3546_s19), 1 }
   0xe   : > { %v3318_v8 = vld [vmem:[%s3578_s15] sm:$0xff]  ;;  %v3380_v10 = vld [vmem:[%s3578_s15 + $0x1f0] sm:$0xff]  ;;  %v3413_v11 = vld [vmem:[%s3578_s15 + $0x2f8] sm:$0xff]  ;;  %s2738_s17 = sshll.u32 %s4146_s19, 3 }
   0xf   : > { %v3350_v9 = vld [vmem:[%s3578_s15 + $0x100] sm:$0xff]  ;;  %v3319_v12 = vld [vmem:[%s3578_s15 + $0x8] sm:$0xff]  ;;  %v3381_v14 = vld [vmem:[%s3578_s15 + $0x1f8] sm:$0xff]  ;;  %s227_s22 = scalar_lea.vmem %s4142_s5, %s2738_s17 }
  0x10   : > { %1321 = vmatpush.bf16.msra.mxu0 %v3452_v1  ;;  %3465 = vmatpush.bf16.msra.mxu1 %v3452_v1  ;;  %v3351_v13 = vld [vmem:[%s3578_s15 + $0x108] sm:$0xff]  ;;  %v3414_v15 = vld [vmem:[%s3578_s15 + $0x300] sm:$0xff]  ;;  %v3320_v16 = vld [vmem:[%s3578_s15 + $0x10] sm:$0xff] }
  0x11   : > { %3466 = vmatpush.bf16.msra.mxu2 %v3452_v1  ;;  %3467 = vmatpush.bf16.msra.mxu3 %v3452_v1  ;;  %v3352_v17 = vld [vmem:[%s3578_s15 + $0x110] sm:$0xff]  ;;  %v3382_v18 = vld [vmem:[%s3578_s15 + $0x200] sm:$0xff]  ;;  %v3415_v19 = vld [vmem:[%s3578_s15 + $0x308] sm:$0xff] }
  0x12   : > { %v3321_v20 = vld [vmem:[%s3578_s15 + $0x18] sm:$0xff]  ;;  %v3383_v22 = vld [vmem:[%s3578_s15 + $0x208] sm:$0xff]  ;;  %v3416_v23 = vld [vmem:[%s3578_s15 + $0x310] sm:$0xff] }
  0x13   : > { %v3353_v21 = vld [vmem:[%s3578_s15 + $0x118] sm:$0xff]  ;;  %v3322_v24 = vld [vmem:[%s3578_s15 + $0x20] sm:$0xff]  ;;  %v3384_v26 = vld [vmem:[%s3578_s15 + $0x210] sm:$0xff] }
  0x14   : > { %1322 = vmatpush.bf16.msra.mxu0 %v3451_v2  ;;  %3468 = vmatpush.bf16.msra.mxu1 %v3451_v2  ;;  %v3354_v25 = vld [vmem:[%s3578_s15 + $0x120] sm:$0xff]  ;;  %v3417_v27 = vld [vmem:[%s3578_s15 + $0x318] sm:$0xff]  ;;  %v3323_v28 = vld [vmem:[%s3578_s15 + $0x28] sm:$0xff] }
  0x15   : > { %3469 = vmatpush.bf16.msra.mxu2 %v3451_v2  ;;  %3470 = vmatpush.bf16.msra.mxu3 %v3451_v2  ;;  %v3355_v29 = vld [vmem:[%s3578_s15 + $0x128] sm:$0xff]  ;;  %v3385_v30 = vld [vmem:[%s3578_s15 + $0x218] sm:$0xff]  ;;  %v3418_v31 = vld [vmem:[%s3578_s15 + $0x320] sm:$0xff] }
  0x16   : > { %v3324_v32 = vld [vmem:[%s3578_s15 + $0x30] sm:$0xff]  ;;  %v3386_v34 = vld [vmem:[%s3578_s15 + $0x220] sm:$0xff]  ;;  %v3419_v35 = vld [vmem:[%s3578_s15 + $0x328] sm:$0xff] }
  0x17   : > { %v3356_v33 = vld [vmem:[%s3578_s15 + $0x130] sm:$0xff]  ;;  %v3325_v36 = vld [vmem:[%s3578_s15 + $0x38] sm:$0xff]  ;;  %v3387_v38 = vld [vmem:[%s3578_s15 + $0x228] sm:$0xff] }
  0x18   : > { %1323 = vmatpush.bf16.msra.mxu0 %v3450_v3  ;;  %3471 = vmatpush.bf16.msra.mxu1 %v3450_v3  ;;  %v3357_v37 = vld [vmem:[%s3578_s15 + $0x138] sm:$0xff]  ;;  %v3420_v39 = vld [vmem:[%s3578_s15 + $0x330] sm:$0xff]  ;;  %v3326_v40 = vld [vmem:[%s3578_s15 + $0x40] sm:$0xff] }
  0x19   : > { %3472 = vmatpush.bf16.msra.mxu2 %v3450_v3  ;;  %3473 = vmatpush.bf16.msra.mxu3 %v3450_v3  ;;  %v3358_v41 = vld [vmem:[%s3578_s15 + $0x140] sm:$0xff]  ;;  %v3388_v44 = vld [vmem:[%s3578_s15 + $0x230] sm:$0xff]  ;;  %v3421_v45 = vld [vmem:[%s3578_s15 + $0x338] sm:$0xff] }
  0x1a   : > { %v3619_v46 = vld [vmem:[%s4139_s2] ss:$0 sm:$0xff]  ;;  %v3327_v63 = vld [vmem:[%s3578_s15 + $0x48] sm:$0xff]  ;;  %v3389_v3 = vld [vmem:[%s3578_s15 + $0x238] sm:$0xff] }
  0x1b   : > { %v3359_v0 = vld [vmem:[%s3578_s15 + $0x148] sm:$0xff] }
  0x1c   : > { %1324 = vmatpush.bf16.msra.mxu0 %v3449_v4  ;;  %3474 = vmatpush.bf16.msra.mxu1 %v3449_v4 }
  0x1d   : > { %3475 = vmatpush.bf16.msra.mxu2 %v3449_v4  ;;  %3476 = vmatpush.bf16.msra.mxu3 %v3449_v4  ;;  %v3422_v4 = vld [vmem:[%s3578_s15 + $0x340] sm:$0xff] }
  0x20   : > { %1325 = vmatpush.bf16.msra.mxu0 %v3448_v5  ;;  %3477 = vmatpush.bf16.msra.mxu1 %v3448_v5 }
  0x21   : > { %3478 = vmatpush.bf16.msra.mxu2 %v3448_v5  ;;  %3479 = vmatpush.bf16.msra.mxu3 %v3448_v5 }
  0x24   : > { %1326 = vmatpush.bf16.msra.mxu0 %v3447_v6  ;;  %3480 = vmatpush.bf16.msra.mxu1 %v3447_v6 }
  0x25   : > { %3481 = vmatpush.bf16.msra.mxu2 %v3447_v6  ;;  %3482 = vmatpush.bf16.msra.mxu3 %v3447_v6 }
  0x28   : > { %1327 = vmatpush.bf16.msra.mxu0 %v3446_v7  ;;  %3483 = vmatpush.bf16.msra.mxu1 %v3446_v7 }
  0x29   : > { %3484 = vmatpush.bf16.msra.mxu2 %v3446_v7  ;;  %3485 = vmatpush.bf16.msra.mxu3 %v3446_v7 }
  0x2b   : > { %1328 = vmatmul.bf16.vlgmr.msra.gmra.mxu0 %v3318_v8  ;;  %1488 = vmatmul.bf16.vlgmr.msra.gmra.mxu1 %v3350_v9 }
  0x2c   : > { %1638 = vmatmul.bf16.vlgmr.msra.gmra.mxu2 %v3380_v10  ;;  %1803 = vmatmul.bf16.vlgmr.msra.gmra.mxu3 %v3413_v11 }
  0x3b   : > { %1333 = vmatmul.bf16.gmra.mxu0 %v3319_v12  ;;  %1493 = vmatmul.bf16.gmra.mxu1 %v3351_v13 }
  0x3c   : > { %1643 = vmatmul.bf16.gmra.mxu2 %v3381_v14  ;;  %1808 = vmatmul.bf16.gmra.mxu3 %v3414_v15 }
  0x4b   : > { %1338 = vmatmul.bf16.gmra.mxu0 %v3320_v16  ;;  %1498 = vmatmul.bf16.gmra.mxu1 %v3352_v17 }
  0x4c   : > { %1648 = vmatmul.bf16.gmra.mxu2 %v3382_v18  ;;  %1813 = vmatmul.bf16.gmra.mxu3 %v3415_v19 }
  0x5b   : > { %1343 = vmatmul.bf16.gmra.mxu0 %v3321_v20  ;;  %1503 = vmatmul.bf16.gmra.mxu1 %v3353_v21 }
  0x5c   : > { %1653 = vmatmul.bf16.gmra.mxu2 %v3383_v22  ;;  %1818 = vmatmul.bf16.gmra.mxu3 %v3416_v23 }
  0x6b   : > { %1348 = vmatmul.bf16.gmra.mxu0 %v3322_v24  ;;  %1508 = vmatmul.bf16.gmra.mxu1 %v3354_v25  ;;  %v3328_v24 = vld [vmem:[%s3578_s15 + $0x50] sm:$0xff] }
  0x6c   : > { %1658 = vmatmul.bf16.gmra.mxu2 %v3384_v26  ;;  %1823 = vmatmul.bf16.gmra.mxu3 %v3417_v27  ;;  %v3360_v25 = vld [vmem:[%s3578_s15 + $0x150] sm:$0xff] }
  0x7b   : > { %1353 = vmatmul.bf16.gmra.mxu0 %v3323_v28  ;;  %1513 = vmatmul.bf16.gmra.mxu1 %v3355_v29  ;;  %v3390_v29 = vld [vmem:[%s3578_s15 + $0x240] sm:$0xff] }
  0x7c   : > { %1663 = vmatmul.bf16.gmra.mxu2 %v3385_v30  ;;  %1828 = vmatmul.bf16.gmra.mxu3 %v3418_v31  ;;  %v3423_v30 = vld [vmem:[%s3578_s15 + $0x348] sm:$0xff] }
  0x8b   : > { %1358 = vmatmul.bf16.gmra.mxu0 %v3324_v32  ;;  %1518 = vmatmul.bf16.gmra.mxu1 %v3356_v33 }
  0x8c   : > { %1668 = vmatmul.bf16.gmra.mxu2 %v3386_v34  ;;  %1833 = vmatmul.bf16.gmra.mxu3 %v3419_v35 }
  0x9b   : > { %1363 = vmatmul.bf16.gmra.mxu0 %v3325_v36  ;;  %1523 = vmatmul.bf16.gmra.mxu1 %v3357_v37 }
  0x9c   : > { %1673 = vmatmul.bf16.gmra.mxu2 %v3387_v38  ;;  %1838 = vmatmul.bf16.gmra.mxu3 %v3420_v39 }
  0xa8   : > { %v1329_v42 = vpop.f32.mrf.mxu0  ;;  %v1489_v43 = vpop.f32.mrf.mxu1 }
  0xa9   : > { %v1330_v47 = vadd.f32 %v3619_v46, %v1329_v42  ;;  %v1490_v48 = vadd.f32 %v3619_v46, %v1489_v43 }
  0xab   : > { %1368 = vmatmul.bf16.gmra.mxu0 %v3326_v40  ;;  %1528 = vmatmul.bf16.gmra.mxu1 %v3358_v41  ;;  %v1969_v53 = vmax.f32 %v1330_v47, 0.0  ;;  %v2033_v54 = vmax.f32 %v1490_v48, 0.0 }
  0xac   : > { %1678 = vmatmul.bf16.gmra.mxu2 %v3388_v44  ;;  %1843 = vmatmul.bf16.gmra.mxu3 %v3421_v45 }
  0xaf   : > { %v3623_v49 = vpop.f32.mrf.mxu2  ;;  %v3625_v50 = vpop.f32.mrf.mxu3 }
  0xb0   : > { %v1331_v51 = vpop.f32.mrf.mxu0  ;;  %v1491_v52 = vpop.f32.mrf.mxu1 }
  0xb1   : > { %v1332_v55 = vadd.f32 %v3619_v46, %v1331_v51  ;;  %v1492_v56 = vadd.f32 %v3619_v46, %v1491_v52 }
  0xb3   : > { %v1970_v57 = vmax.f32 %v1332_v55, 0.0  ;;  %v2034_v58 = vmax.f32 %v1492_v56, 0.0 }
  0xb5   : > { %v2225_v59 = vadd.f32 %v1970_v57, %v1969_v53  ;;  %v2299_v60 = vadd.f32 %v2034_v58, %v2033_v54 }
  0xb7   : > { %v3629_v61 = vpop.f32.mrf.mxu2  ;;  %v3631_v62 = vpop.f32.mrf.mxu3 }
  0xb8   : > { %v1334_v1 = vpop.f32.mrf.mxu0  ;;  %v1494_v2 = vpop.f32.mrf.mxu1 }
  0xb9   : > { %v1335_v5 = vadd.f32 %v3619_v46, %v1334_v1  ;;  %v1495_v6 = vadd.f32 %v3619_v46, %v1494_v2 }
  0xbb   : > { %v1971_v7 = vmax.f32 %v1335_v5, 0.0  ;;  %v2035_v8 = vmax.f32 %v1495_v6, 0.0  ;;  %1373 = vmatmul.bf16.gmra.mxu0 %v3327_v63  ;;  %1533 = vmatmul.bf16.gmra.mxu1 %v3359_v0 }
  0xbc   : > { %1683 = vmatmul.bf16.gmra.mxu2 %v3389_v3  ;;  %1848 = vmatmul.bf16.gmra.mxu3 %v3422_v4  ;;  %v3391_v3 = vld [vmem:[%s3578_s15 + $0x248] sm:$0xff]  ;;  %v3424_v4 = vld [vmem:[%s3578_s15 + $0x350] sm:$0xff] }
  0xbd   : > { %v2226_v9 = vadd.f32 %v2225_v59, %v1971_v7  ;;  %v2300_v10 = vadd.f32 %v2299_v60, %v2035_v8  ;;  %v3329_v59 = vld [vmem:[%s3578_s15 + $0x58] sm:$0xff] }
  0xbe   : > { %v3361_v60 = vld [vmem:[%s3578_s15 + $0x158] sm:$0xff] }
  0xbf   : > { %v3639_v11 = vpop.f32.mrf.mxu2  ;;  %v1809_v12 = vpop.f32.mrf.mxu3 }
  0xc0   : > { %v1336_v13 = vpop.f32.mrf.mxu0  ;;  %v1496_v14 = vpop.f32.mrf.mxu1  ;;  %v1810_v21 = vadd.f32 %v3619_v46, %v1809_v12 }
  0xc1   : > { %v1337_v15 = vadd.f32 %v3619_v46, %v1336_v13  ;;  %v1497_v16 = vadd.f32 %v3619_v46, %v1496_v14 }
  0xc2   : > { %v2161_v33 = vmax.f32 %v1810_v21, 0.0 }
  0xc3   : > { %v1972_v17 = vmax.f32 %v1337_v15, 0.0  ;;  %v2036_v18 = vmax.f32 %v1497_v16, 0.0 }
  0xc5   : > { %v2227_v19 = vadd.f32 %v2226_v9, %v1972_v17  ;;  %v2301_v20 = vadd.f32 %v2300_v10, %v2036_v18  ;;  %v3461_v17 = vld [vmem:[%s4140_s3 + $0x38] sm:$0xff] }
  0xc6   : > { %2637 = vmatpush.bf16.msrb.mxu1 %v3461_v17 }
  0xc7   : > { %v3644_v22 = vpop.f32.mrf.mxu2  ;;  %v1811_v23 = vpop.f32.mrf.mxu3 }
  0xc8   : > { %v1812_v26 = vadd.f32 %v3619_v46, %v1811_v23  ;;  %v1339_v27 = vpop.f32.mrf.mxu0  ;;  %v1499_v28 = vpop.f32.mrf.mxu1 }
  0xc9   : > { %v1340_v31 = vadd.f32 %v3619_v46, %v1339_v27  ;;  %v1500_v32 = vadd.f32 %v3619_v46, %v1499_v28 }
  0xca   : > { %v2162_v34 = vmax.f32 %v1812_v26, 0.0 }
  0xcb   : > { %v1973_v35 = vmax.f32 %v1340_v31, 0.0  ;;  %v2037_v36 = vmax.f32 %v1500_v32, 0.0  ;;  %1378 = vmatmul.bf16.gmra.mxu0 %v3328_v24  ;;  %1538 = vmatmul.bf16.gmra.mxu1 %v3360_v25 }
  0xcc   : > { %v2447_v37 = vadd.f32 %v2162_v34, %v2161_v33  ;;  %1688 = vmatmul.bf16.gmra.mxu2 %v3390_v29  ;;  %1853 = vmatmul.bf16.gmra.mxu3 %v3423_v30 }
  0xcd   : > { %v2228_v38 = vadd.f32 %v2227_v19, %v1973_v35  ;;  %v2302_v39 = vadd.f32 %v2301_v20, %v2037_v36 }
  0xcf   : > { %v1649_v40 = vpop.f32.mrf.mxu2  ;;  %v1814_v41 = vpop.f32.mrf.mxu3 }
  0xd0   : > { %v1815_v42 = vadd.f32 %v3619_v46, %v1814_v41  ;;  %v1341_v43 = vpop.f32.mrf.mxu0  ;;  %v1501_v44 = vpop.f32.mrf.mxu1  ;;  %v1650_v56 = vadd.f32 %v3619_v46, %v1649_v40 }
  0xd1   : > { %v1342_v45 = vadd.f32 %v3619_v46, %v1341_v43  ;;  %v1502_v47 = vadd.f32 %v3619_v46, %v1501_v44  ;;  %v3392_v43 = vld [vmem:[%s3578_s15 + $0x250] sm:$0xff]  ;;  %v3425_v44 = vld [vmem:[%s3578_s15 + $0x358] sm:$0xff] }
  0xd2   : > { %v2163_v48 = vmax.f32 %v1815_v42, 0.0  ;;  %v2097_v7 = vmax.f32 %v1650_v56, 0.0 }
  0xd3   : > { %v1974_v51 = vmax.f32 %v1342_v45, 0.0  ;;  %v2038_v52 = vmax.f32 %v1502_v47, 0.0 }
  0xd4   : > { %v2448_v53 = vadd.f32 %v2447_v37, %v2163_v48  ;;  %v3330_v37 = vld [vmem:[%s3578_s15 + $0x60] sm:$0xff] }
  0xd5   : > { %v2229_v54 = vadd.f32 %v2228_v38, %v1974_v51  ;;  %v2303_v55 = vadd.f32 %v2302_v39, %v2038_v52  ;;  %v3362_v38 = vld [vmem:[%s3578_s15 + $0x160] sm:$0xff] }
  0xd7   : > { %v1651_v57 = vpop.f32.mrf.mxu2  ;;  %v1816_v58 = vpop.f32.mrf.mxu3 }
  0xd8   : > { %v1652_v63 = vadd.f32 %v3619_v46, %v1651_v57  ;;  %v1817_v0 = vadd.f32 %v3619_v46, %v1816_v58  ;;  %v1344_v1 = vpop.f32.mrf.mxu0  ;;  %v1504_v2 = vpop.f32.mrf.mxu1 }
  0xd9   : > { %v1345_v5 = vadd.f32 %v3619_v46, %v1344_v1  ;;  %v1505_v6 = vadd.f32 %v3619_v46, %v1504_v2 }
  0xda   : > { %v2098_v8 = vmax.f32 %v1652_v63, 0.0  ;;  %v2164_v9 = vmax.f32 %v1817_v0, 0.0 }
  0xdb   : > { %v1975_v10 = vmax.f32 %v1345_v5, 0.0  ;;  %v2039_v12 = vmax.f32 %v1505_v6, 0.0  ;;  %1383 = vmatmul.bf16.gmra.mxu0 %v3329_v59  ;;  %1543 = vmatmul.bf16.gmra.mxu1 %v3361_v60 }
  0xdc   : > { %v2373_v13 = vadd.f32 %v2098_v8, %v2097_v7  ;;  %v2449_v14 = vadd.f32 %v2448_v53, %v2164_v9  ;;  %1693 = vmatmul.bf16.gmra.mxu2 %v3391_v3  ;;  %1858 = vmatmul.bf16.gmra.mxu3 %v3424_v4 }
  0xdd   : > { %v2230_v15 = vadd.f32 %v2229_v54, %v1975_v10  ;;  %v2304_v16 = vadd.f32 %v2303_v55, %v2039_v12 }
  0xdf   : > { %v1654_v18 = vpop.f32.mrf.mxu2  ;;  %v1819_v19 = vpop.f32.mrf.mxu3 }
  0xe0   : > { %v1655_v20 = vadd.f32 %v3619_v46, %v1654_v18  ;;  %v1820_v21 = vadd.f32 %v3619_v46, %v1819_v19  ;;  %v1346_v23 = vpop.f32.mrf.mxu0  ;;  %v1506_v24 = vpop.f32.mrf.mxu1 }
  0xe1   : > { %v1347_v25 = vadd.f32 %v3619_v46, %v1346_v23  ;;  %v1507_v26 = vadd.f32 %v3619_v46, %v1506_v24  ;;  %v3426_v23 = vld [vmem:[%s3578_s15 + $0x360] sm:$0xff] }
  0xe2   : > { %v2099_v27 = vmax.f32 %v1655_v20, 0.0  ;;  %v2165_v28 = vmax.f32 %v1820_v21, 0.0  ;;  %v3393_v21 = vld [vmem:[%s3578_s15 + $0x258] sm:$0xff] }
  0xe3   : > { %v1976_v29 = vmax.f32 %v1347_v25, 0.0  ;;  %v2040_v30 = vmax.f32 %v1507_v26, 0.0 }
  0xe4   : > { %v2374_v31 = vadd.f32 %v2373_v13, %v2099_v27  ;;  %v2450_v32 = vadd.f32 %v2449_v14, %v2165_v28 }
  0xe5   : > { %v2231_v33 = vadd.f32 %v2230_v15, %v1976_v29  ;;  %v2305_v34 = vadd.f32 %v2304_v16, %v2040_v30  ;;  %v3331_v15 = vld [vmem:[%s3578_s15 + $0x68] sm:$0xff] }
  0xe6   : > { %v3363_v16 = vld [vmem:[%s3578_s15 + $0x168] sm:$0xff] }
  0xe7   : > { %v1656_v35 = vpop.f32.mrf.mxu2  ;;  %v1821_v36 = vpop.f32.mrf.mxu3 }
  0xe8   : > { %v1657_v39 = vadd.f32 %v3619_v46, %v1656_v35  ;;  %v1822_v40 = vadd.f32 %v3619_v46, %v1821_v36  ;;  %v1349_v41 = vpop.f32.mrf.mxu0  ;;  %v1509_v42 = vpop.f32.mrf.mxu1 }
  0xe9   : > { %v1350_v45 = vadd.f32 %v3619_v46, %v1349_v41  ;;  %v1510_v47 = vadd.f32 %v3619_v46, %v1509_v42 }
  0xea   : > { %v2100_v48 = vmax.f32 %v1657_v39, 0.0  ;;  %v2166_v51 = vmax.f32 %v1822_v40, 0.0 }
  0xeb   : > { %v1977_v52 = vmax.f32 %v1350_v45, 0.0  ;;  %v2041_v53 = vmax.f32 %v1510_v47, 0.0  ;;  %1388 = vmatmul.bf16.gmra.mxu0 %v3330_v37  ;;  %1548 = vmatmul.bf16.gmra.mxu1 %v3362_v38 }
  0xec   : > { %v2375_v54 = vadd.f32 %v2374_v31, %v2100_v48  ;;  %v2451_v55 = vadd.f32 %v2450_v32, %v2166_v51  ;;  %1698 = vmatmul.bf16.gmra.mxu2 %v3392_v43  ;;  %1863 = vmatmul.bf16.gmra.mxu3 %v3425_v44 }
  0xed   : > { %v2232_v56 = vadd.f32 %v2231_v33, %v1977_v52  ;;  %v2306_v57 = vadd.f32 %v2305_v34, %v2041_v53 }
  0xef   : > { %v1659_v58 = vpop.f32.mrf.mxu2  ;;  %v1824_v59 = vpop.f32.mrf.mxu3 }
  0xf0   : > { %v1660_v60 = vadd.f32 %v3619_v46, %v1659_v58  ;;  %v1825_v63 = vadd.f32 %v3619_v46, %v1824_v59  ;;  %v1351_v0 = vpop.f32.mrf.mxu0  ;;  %v1511_v1 = vpop.f32.mrf.mxu1 }
  0xf1   : > { %v1352_v2 = vadd.f32 %v3619_v46, %v1351_v0  ;;  %v1512_v3 = vadd.f32 %v3619_v46, %v1511_v1  ;;  %v3427_v0 = vld [vmem:[%s3578_s15 + $0x368] sm:$0xff] }
  0xf2   : > { %v2101_v4 = vmax.f32 %v1660_v60, 0.0  ;;  %v2167_v5 = vmax.f32 %v1825_v63, 0.0  ;;  %v3394_v63 = vld [vmem:[%s3578_s15 + $0x260] sm:$0xff] }
  0xf3   : > { %v1978_v6 = vmax.f32 %v1352_v2, 0.0  ;;  %v2042_v7 = vmax.f32 %v1512_v3, 0.0 }
  0xf4   : > { %v2376_v8 = vadd.f32 %v2375_v54, %v2101_v4  ;;  %v2452_v9 = vadd.f32 %v2451_v55, %v2167_v5  ;;  %v3332_v55 = vld [vmem:[%s3578_s15 + $0x70] sm:$0xff] }
  0xf5   : > { %v2233_v10 = vadd.f32 %v2232_v56, %v1978_v6  ;;  %v2307_v12 = vadd.f32 %v2306_v57, %v2042_v7  ;;  %v3364_v56 = vld [vmem:[%s3578_s15 + $0x170] sm:$0xff] }
  0xf7   : > { %v1661_v13 = vpop.f32.mrf.mxu2  ;;  %v1826_v14 = vpop.f32.mrf.mxu3 }
  0xf8   : > { %v1662_v17 = vadd.f32 %v3619_v46, %v1661_v13  ;;  %v1827_v18 = vadd.f32 %v3619_v46, %v1826_v14  ;;  %v1354_v19 = vpop.f32.mrf.mxu0  ;;  %v1514_v20 = vpop.f32.mrf.mxu1 }
  0xf9   : > { %v1355_v24 = vadd.f32 %v3619_v46, %v1354_v19  ;;  %v1515_v25 = vadd.f32 %v3619_v46, %v1514_v20 }
  0xfa   : > { %v2102_v26 = vmax.f32 %v1662_v17, 0.0  ;;  %v2168_v27 = vmax.f32 %v1827_v18, 0.0 }
  0xfb   : > { %v1979_v28 = vmax.f32 %v1355_v24, 0.0  ;;  %v2043_v29 = vmax.f32 %v1515_v25, 0.0  ;;  %1393 = vmatmul.bf16.gmra.mxu0 %v3331_v15  ;;  %1553 = vmatmul.bf16.gmra.mxu1 %v3363_v16 }
  0xfc   : > { %v2377_v30 = vadd.f32 %v2376_v8, %v2102_v26  ;;  %v2453_v31 = vadd.f32 %v2452_v9, %v2168_v27  ;;  %1703 = vmatmul.bf16.gmra.mxu2 %v3393_v21  ;;  %1868 = vmatmul.bf16.gmra.mxu3 %v3426_v23 }
  0xfd   : > { %v2234_v32 = vadd.f32 %v2233_v10, %v1979_v28  ;;  %v2308_v33 = vadd.f32 %v2307_v12, %v2043_v29  ;;  %v3460_v29 = vld [vmem:[%s4140_s3 + $0x30] sm:$0xff] }
  0xfe   : > { %2638 = vmatpush.bf16.msrb.mxu1 %v3460_v29 }
  0xff   : > { %v1664_v34 = vpop.f32.mrf.mxu2  ;;  %v1829_v35 = vpop.f32.mrf.mxu3 }
 0x100   : > { %v1665_v36 = vadd.f32 %v3619_v46, %v1664_v34  ;;  %v1830_v37 = vadd.f32 %v3619_v46, %v1829_v35  ;;  %v1356_v38 = vpop.f32.mrf.mxu0  ;;  %v1516_v39 = vpop.f32.mrf.mxu1 }
 0x101   : > { %v1357_v40 = vadd.f32 %v3619_v46, %v1356_v38  ;;  %v1517_v41 = vadd.f32 %v3619_v46, %v1516_v39  ;;  %v3395_v38 = vld [vmem:[%s3578_s15 + $0x268] sm:$0xff]  ;;  %v3428_v39 = vld [vmem:[%s3578_s15 + $0x370] sm:$0xff] }
 0x102   : > { %v2103_v42 = vmax.f32 %v1665_v36, 0.0  ;;  %v2169_v43 = vmax.f32 %v1830_v37, 0.0 }
 0x103   : > { %v1980_v44 = vmax.f32 %v1357_v40, 0.0  ;;  %v2044_v45 = vmax.f32 %v1517_v41, 0.0 }
 0x104   : > { %v2378_v47 = vadd.f32 %v2377_v30, %v2103_v42  ;;  %v2454_v48 = vadd.f32 %v2453_v31, %v2169_v43 }
 0x105   : > { %v2235_v51 = vadd.f32 %v2234_v32, %v1980_v44  ;;  %v2309_v52 = vadd.f32 %v2308_v33, %v2044_v45  ;;  %v3333_v32 = vld [vmem:[%s3578_s15 + $0x78] sm:$0xff] }
 0x106   : > { %v3365_v33 = vld [vmem:[%s3578_s15 + $0x178] sm:$0xff] }
 0x107   : > { %v1666_v53 = vpop.f32.mrf.mxu2  ;;  %v1831_v54 = vpop.f32.mrf.mxu3 }
 0x108   : > { %v1667_v57 = vadd.f32 %v3619_v46, %v1666_v53  ;;  %v1832_v58 = vadd.f32 %v3619_v46, %v1831_v54  ;;  %v1359_v59 = vpop.f32.mrf.mxu0  ;;  %v1519_v60 = vpop.f32.mrf.mxu1 }
 0x109   : > { %v1360_v1 = vadd.f32 %v3619_v46, %v1359_v59  ;;  %v1520_v2 = vadd.f32 %v3619_v46, %v1519_v60 }
 0x10a   : > { %v2104_v3 = vmax.f32 %v1667_v57, 0.0  ;;  %v2170_v4 = vmax.f32 %v1832_v58, 0.0 }
 0x10b   : > { %v1981_v5 = vmax.f32 %v1360_v1, 0.0  ;;  %v2045_v6 = vmax.f32 %v1520_v2, 0.0  ;;  %1398 = vmatmul.bf16.gmra.mxu0 %v3332_v55  ;;  %1558 = vmatmul.bf16.gmra.mxu1 %v3364_v56 }
 0x10c   : > { %v2379_v7 = vadd.f32 %v2378_v47, %v2104_v3  ;;  %v2455_v8 = vadd.f32 %v2454_v48, %v2170_v4  ;;  %1708 = vmatmul.bf16.gmra.mxu2 %v3394_v63  ;;  %1873 = vmatmul.bf16.gmra.mxu3 %v3427_v0 }
 0x10d   : > { %v2236_v9 = vadd.f32 %v2235_v51, %v1981_v5  ;;  %v2310_v10 = vadd.f32 %v2309_v52, %v2045_v6 }
 0x10f   : > { %v1669_v12 = vpop.f32.mrf.mxu2  ;;  %v1834_v13 = vpop.f32.mrf.mxu3 }
 0x110   : > { %v1670_v14 = vadd.f32 %v3619_v46, %v1669_v12  ;;  %v1835_v15 = vadd.f32 %v3619_v46, %v1834_v13  ;;  %v1361_v16 = vpop.f32.mrf.mxu0  ;;  %v1521_v17 = vpop.f32.mrf.mxu1 }
 0x111   : > { %v1362_v18 = vadd.f32 %v3619_v46, %v1361_v16  ;;  %v1522_v19 = vadd.f32 %v3619_v46, %v1521_v17  ;;  %v3396_v16 = vld [vmem:[%s3578_s15 + $0x270] sm:$0xff]  ;;  %v3429_v17 = vld [vmem:[%s3578_s15 + $0x378] sm:$0xff] }
 0x112   : > { %v2105_v20 = vmax.f32 %v1670_v14, 0.0  ;;  %v2171_v21 = vmax.f32 %v1835_v15, 0.0 }
 0x113   : > { %v1982_v23 = vmax.f32 %v1362_v18, 0.0  ;;  %v2046_v24 = vmax.f32 %v1522_v19, 0.0 }
 0x114   : > { %v2380_v25 = vadd.f32 %v2379_v7, %v2105_v20  ;;  %v2456_v26 = vadd.f32 %v2455_v8, %v2171_v21 }
 0x115   : > { %v2237_v27 = vadd.f32 %v2236_v9, %v1982_v23  ;;  %v2311_v28 = vadd.f32 %v2310_v10, %v2046_v24  ;;  %v3334_v9 = vld [vmem:[%s3578_s15 + $0x80] sm:$0xff] }
 0x116   : > { %v3366_v10 = vld [vmem:[%s3578_s15 + $0x180] sm:$0xff] }
 0x117   : > { %v1671_v30 = vpop.f32.mrf.mxu2  ;;  %v1836_v31 = vpop.f32.mrf.mxu3 }
 0x118   : > { %v1672_v34 = vadd.f32 %v3619_v46, %v1671_v30  ;;  %v1837_v35 = vadd.f32 %v3619_v46, %v1836_v31  ;;  %v1364_v36 = vpop.f32.mrf.mxu0  ;;  %v1524_v37 = vpop.f32.mrf.mxu1 }
 0x119   : > { %v1365_v40 = vadd.f32 %v3619_v46, %v1364_v36  ;;  %v1525_v41 = vadd.f32 %v3619_v46, %v1524_v37 }
 0x11a   : > { %v2106_v42 = vmax.f32 %v1672_v34, 0.0  ;;  %v2172_v43 = vmax.f32 %v1837_v35, 0.0 }
 0x11b   : > { %v1983_v44 = vmax.f32 %v1365_v40, 0.0  ;;  %v2047_v45 = vmax.f32 %v1525_v41, 0.0  ;;  %1403 = vmatmul.bf16.gmra.mxu0 %v3333_v32  ;;  %1563 = vmatmul.bf16.gmra.mxu1 %v3365_v33 }
 0x11c   : > { %v2381_v47 = vadd.f32 %v2380_v25, %v2106_v42  ;;  %v2457_v48 = vadd.f32 %v2456_v26, %v2172_v43  ;;  %1713 = vmatmul.bf16.gmra.mxu2 %v3395_v38  ;;  %1878 = vmatmul.bf16.gmra.mxu3 %v3428_v39 }
 0x11d   : > { %v2238_v51 = vadd.f32 %v2237_v27, %v1983_v44  ;;  %v2312_v52 = vadd.f32 %v2311_v28, %v2047_v45 }
 0x11f   : > { %v1674_v53 = vpop.f32.mrf.mxu2  ;;  %v1839_v54 = vpop.f32.mrf.mxu3 }
 0x120   : > { %v1675_v55 = vadd.f32 %v3619_v46, %v1674_v53  ;;  %v1840_v56 = vadd.f32 %v3619_v46, %v1839_v54  ;;  %v1366_v57 = vpop.f32.mrf.mxu0  ;;  %v1526_v58 = vpop.f32.mrf.mxu1 }
 0x121   : > { %v1367_v59 = vadd.f32 %v3619_v46, %v1366_v57  ;;  %v1527_v60 = vadd.f32 %v3619_v46, %v1526_v58  ;;  %v3430_v57 = vld [vmem:[%s3578_s15 + $0x380] sm:$0xff] }
 0x122   : > { %v2107_v63 = vmax.f32 %v1675_v55, 0.0  ;;  %v2173_v0 = vmax.f32 %v1840_v56, 0.0  ;;  %v3397_v56 = vld [vmem:[%s3578_s15 + $0x278] sm:$0xff] }
 0x123   : > { %v1984_v1 = vmax.f32 %v1367_v59, 0.0  ;;  %v2048_v2 = vmax.f32 %v1527_v60, 0.0 }
 0x124   : > { %v2382_v3 = vadd.f32 %v2381_v47, %v2107_v63  ;;  %v2458_v4 = vadd.f32 %v2457_v48, %v2173_v0  ;;  %v3335_v48 = vld [vmem:[%s3578_s15 + $0x88] sm:$0xff] }
 0x125   : > { %v2239_v5 = vadd.f32 %v2238_v51, %v1984_v1  ;;  %v2313_v6 = vadd.f32 %v2312_v52, %v2048_v2  ;;  %v3367_v51 = vld [vmem:[%s3578_s15 + $0x188] sm:$0xff] }
 0x127   : > { %v1676_v7 = vpop.f32.mrf.mxu2  ;;  %v1841_v8 = vpop.f32.mrf.mxu3 }
 0x128   : > { %v1677_v12 = vadd.f32 %v3619_v46, %v1676_v7  ;;  %v1842_v13 = vadd.f32 %v3619_v46, %v1841_v8  ;;  %v1369_v14 = vpop.f32.mrf.mxu0  ;;  %v1529_v15 = vpop.f32.mrf.mxu1 }
 0x129   : > { %v1370_v18 = vadd.f32 %v3619_v46, %v1369_v14  ;;  %v1530_v19 = vadd.f32 %v3619_v46, %v1529_v15 }
 0x12a   : > { %v2108_v20 = vmax.f32 %v1677_v12, 0.0  ;;  %v2174_v21 = vmax.f32 %v1842_v13, 0.0 }
 0x12b   : > { %v1985_v23 = vmax.f32 %v1370_v18, 0.0  ;;  %v2049_v24 = vmax.f32 %v1530_v19, 0.0  ;;  %1408 = vmatmul.bf16.gmra.mxu0 %v3334_v9  ;;  %1568 = vmatmul.bf16.gmra.mxu1 %v3366_v10 }
 0x12c   : > { %v2383_v25 = vadd.f32 %v2382_v3, %v2108_v20  ;;  %v2459_v26 = vadd.f32 %v2458_v4, %v2174_v21  ;;  %1718 = vmatmul.bf16.gmra.mxu2 %v3396_v16  ;;  %1883 = vmatmul.bf16.gmra.mxu3 %v3429_v17 }
 0x12d   : > { %v2240_v27 = vadd.f32 %v2239_v5, %v1985_v23  ;;  %v2314_v28 = vadd.f32 %v2313_v6, %v2049_v24 }
 0x12f   : > { %v1679_v29 = vpop.f32.mrf.mxu2  ;;  %v1844_v30 = vpop.f32.mrf.mxu3 }
 0x130   : > { %v1680_v31 = vadd.f32 %v3619_v46, %v1679_v29  ;;  %v1845_v32 = vadd.f32 %v3619_v46, %v1844_v30  ;;  %v1371_v33 = vpop.f32.mrf.mxu0  ;;  %v1531_v34 = vpop.f32.mrf.mxu1 }
 0x131   : > { %v1372_v35 = vadd.f32 %v3619_v46, %v1371_v33  ;;  %v1532_v36 = vadd.f32 %v3619_v46, %v1531_v34  ;;  %v3431_v33 = vld [vmem:[%s3578_s15 + $0x388] sm:$0xff] }
 0x132   : > { %v2109_v37 = vmax.f32 %v1680_v31, 0.0  ;;  %v2175_v38 = vmax.f32 %v1845_v32, 0.0  ;;  %v3398_v32 = vld [vmem:[%s3578_s15 + $0x280] sm:$0xff] }
 0x133   : > { %v1986_v39 = vmax.f32 %v1372_v35, 0.0  ;;  %v2050_v40 = vmax.f32 %v1532_v36, 0.0 }
 0x134   : > { %v2384_v41 = vadd.f32 %v2383_v25, %v2109_v37  ;;  %v2460_v42 = vadd.f32 %v2459_v26, %v2175_v38  ;;  %v3336_v26 = vld [vmem:[%s3578_s15 + $0x90] sm:$0xff] }
 0x135   : > { %v2241_v43 = vadd.f32 %v2240_v27, %v1986_v39  ;;  %v2315_v44 = vadd.f32 %v2314_v28, %v2050_v40  ;;  %v3368_v27 = vld [vmem:[%s3578_s15 + $0x190] sm:$0xff] }
 0x137   : > { %v1681_v45 = vpop.f32.mrf.mxu2  ;;  %v1846_v47 = vpop.f32.mrf.mxu3 }
 0x138   : > { %v1682_v52 = vadd.f32 %v3619_v46, %v1681_v45  ;;  %v1847_v53 = vadd.f32 %v3619_v46, %v1846_v47  ;;  %v1374_v54 = vpop.f32.mrf.mxu0  ;;  %v1534_v55 = vpop.f32.mrf.mxu1 }
 0x139   : > { %v1375_v58 = vadd.f32 %v3619_v46, %v1374_v54  ;;  %v1535_v59 = vadd.f32 %v3619_v46, %v1534_v55 }
 0x13a   : > { %v2110_v60 = vmax.f32 %v1682_v52, 0.0  ;;  %v2176_v63 = vmax.f32 %v1847_v53, 0.0 }
 0x13b   : > { %v1987_v0 = vmax.f32 %v1375_v58, 0.0  ;;  %v2051_v1 = vmax.f32 %v1535_v59, 0.0  ;;  %1413 = vmatmul.bf16.gmra.mxu0 %v3335_v48  ;;  %1573 = vmatmul.bf16.gmra.mxu1 %v3367_v51 }
 0x13c   : > { %v2385_v2 = vadd.f32 %v2384_v41, %v2110_v60  ;;  %v2461_v3 = vadd.f32 %v2460_v42, %v2176_v63  ;;  %1723 = vmatmul.bf16.gmra.mxu2 %v3397_v56  ;;  %1888 = vmatmul.bf16.gmra.mxu3 %v3430_v57 }
 0x13d   : > { %v2242_v4 = vadd.f32 %v2241_v43, %v1987_v0  ;;  %v2316_v5 = vadd.f32 %v2315_v44, %v2051_v1  ;;  %v3459_v1 = vld [vmem:[%s4140_s3 + $0x28] sm:$0xff] }
 0x13e   : > { %2639 = vmatpush.bf16.msrb.mxu1 %v3459_v1 }
 0x13f   : > { %v1684_v6 = vpop.f32.mrf.mxu2  ;;  %v1849_v7 = vpop.f32.mrf.mxu3 }
 0x140   : > { %v1685_v8 = vadd.f32 %v3619_v46, %v1684_v6  ;;  %v1850_v9 = vadd.f32 %v3619_v46, %v1849_v7  ;;  %v1376_v10 = vpop.f32.mrf.mxu0  ;;  %v1536_v12 = vpop.f32.mrf.mxu1 }
 0x141   : > { %v1377_v13 = vadd.f32 %v3619_v46, %v1376_v10  ;;  %v1537_v14 = vadd.f32 %v3619_v46, %v1536_v12  ;;  %v3399_v10 = vld [vmem:[%s3578_s15 + $0x288] sm:$0xff]  ;;  %v3432_v12 = vld [vmem:[%s3578_s15 + $0x390] sm:$0xff] }
 0x142   : > { %v2111_v15 = vmax.f32 %v1685_v8, 0.0  ;;  %v2177_v16 = vmax.f32 %v1850_v9, 0.0 }
 0x143   : > { %v1988_v17 = vmax.f32 %v1377_v13, 0.0  ;;  %v2052_v18 = vmax.f32 %v1537_v14, 0.0 }
 0x144   : > { %v2386_v19 = vadd.f32 %v2385_v2, %v2111_v15  ;;  %v2462_v20 = vadd.f32 %v2461_v3, %v2177_v16 }
 0x145   : > { %v2243_v21 = vadd.f32 %v2242_v4, %v1988_v17  ;;  %v2317_v23 = vadd.f32 %v2316_v5, %v2052_v18  ;;  %v3337_v4 = vld [vmem:[%s3578_s15 + $0x98] sm:$0xff] }
 0x146   : > { %v3369_v5 = vld [vmem:[%s3578_s15 + $0x198] sm:$0xff] }
 0x147   : > { %v1686_v24 = vpop.f32.mrf.mxu2  ;;  %v1851_v25 = vpop.f32.mrf.mxu3 }
 0x148   : > { %v1687_v28 = vadd.f32 %v3619_v46, %v1686_v24  ;;  %v1852_v29 = vadd.f32 %v3619_v46, %v1851_v25  ;;  %v1379_v30 = vpop.f32.mrf.mxu0  ;;  %v1539_v31 = vpop.f32.mrf.mxu1 }
 0x149   : > { %v1380_v34 = vadd.f32 %v3619_v46, %v1379_v30  ;;  %v1540_v35 = vadd.f32 %v3619_v46, %v1539_v31 }
 0x14a   : > { %v2112_v36 = vmax.f32 %v1687_v28, 0.0  ;;  %v2178_v37 = vmax.f32 %v1852_v29, 0.0 }
 0x14b   : > { %v1989_v38 = vmax.f32 %v1380_v34, 0.0  ;;  %v2053_v39 = vmax.f32 %v1540_v35, 0.0  ;;  %1418 = vmatmul.bf16.gmra.mxu0 %v3336_v26  ;;  %1578 = vmatmul.bf16.gmra.mxu1 %v3368_v27 }
 0x14c   : > { %v2387_v40 = vadd.f32 %v2386_v19, %v2112_v36  ;;  %v2463_v41 = vadd.f32 %v2462_v20, %v2178_v37  ;;  %1728 = vmatmul.bf16.gmra.mxu2 %v3398_v32  ;;  %1893 = vmatmul.bf16.gmra.mxu3 %v3431_v33 }
 0x14d   : > { %v2244_v42 = vadd.f32 %v2243_v21, %v1989_v38  ;;  %v2318_v43 = vadd.f32 %v2317_v23, %v2053_v39 }
 0x14f   : > { %v1689_v44 = vpop.f32.mrf.mxu2  ;;  %v1854_v45 = vpop.f32.mrf.mxu3 }
 0x150   : > { %v1690_v47 = vadd.f32 %v3619_v46, %v1689_v44  ;;  %v1855_v48 = vadd.f32 %v3619_v46, %v1854_v45  ;;  %v1381_v51 = vpop.f32.mrf.mxu0  ;;  %v1541_v52 = vpop.f32.mrf.mxu1 }
 0x151   : > { %v1382_v53 = vadd.f32 %v3619_v46, %v1381_v51  ;;  %v1542_v54 = vadd.f32 %v3619_v46, %v1541_v52  ;;  %v3400_v51 = vld [vmem:[%s3578_s15 + $0x290] sm:$0xff]  ;;  %v3433_v52 = vld [vmem:[%s3578_s15 + $0x398] sm:$0xff] }
 0x152   : > { %v2113_v55 = vmax.f32 %v1690_v47, 0.0  ;;  %v2179_v56 = vmax.f32 %v1855_v48, 0.0 }
 0x153   : > { %v1990_v57 = vmax.f32 %v1382_v53, 0.0  ;;  %v2054_v58 = vmax.f32 %v1542_v54, 0.0 }
 0x154   : > { %v2388_v59 = vadd.f32 %v2387_v40, %v2113_v55  ;;  %v2464_v60 = vadd.f32 %v2463_v41, %v2179_v56 }
 0x155   : > { %v2245_v63 = vadd.f32 %v2244_v42, %v1990_v57  ;;  %v2319_v0 = vadd.f32 %v2318_v43, %v2054_v58  ;;  %v3338_v42 = vld [vmem:[%s3578_s15 + $0xa0] sm:$0xff] }
 0x156   : > { %v3370_v43 = vld [vmem:[%s3578_s15 + $0x1a0] sm:$0xff] }
 0x157   : > { %v1691_v2 = vpop.f32.mrf.mxu2  ;;  %v1856_v3 = vpop.f32.mrf.mxu3 }
 0x158   : > { %v1692_v6 = vadd.f32 %v3619_v46, %v1691_v2  ;;  %v1857_v7 = vadd.f32 %v3619_v46, %v1856_v3  ;;  %v1384_v8 = vpop.f32.mrf.mxu0  ;;  %v1544_v9 = vpop.f32.mrf.mxu1 }
 0x159   : > { %v1385_v13 = vadd.f32 %v3619_v46, %v1384_v8  ;;  %v1545_v14 = vadd.f32 %v3619_v46, %v1544_v9 }
 0x15a   : > { %v2114_v15 = vmax.f32 %v1692_v6, 0.0  ;;  %v2180_v16 = vmax.f32 %v1857_v7, 0.0 }
 0x15b   : > { %v1991_v17 = vmax.f32 %v1385_v13, 0.0  ;;  %v2055_v18 = vmax.f32 %v1545_v14, 0.0  ;;  %1423 = vmatmul.bf16.gmra.mxu0 %v3337_v4  ;;  %1583 = vmatmul.bf16.gmra.mxu1 %v3369_v5 }
 0x15c   : > { %v2389_v19 = vadd.f32 %v2388_v59, %v2114_v15  ;;  %v2465_v20 = vadd.f32 %v2464_v60, %v2180_v16  ;;  %1733 = vmatmul.bf16.gmra.mxu2 %v3399_v10  ;;  %1898 = vmatmul.bf16.gmra.mxu3 %v3432_v12 }
 0x15d   : > { %v2246_v21 = vadd.f32 %v2245_v63, %v1991_v17  ;;  %v2320_v23 = vadd.f32 %v2319_v0, %v2055_v18 }
 0x15f   : > { %v1694_v24 = vpop.f32.mrf.mxu2  ;;  %v1859_v25 = vpop.f32.mrf.mxu3 }
 0x160   : > { %v1695_v26 = vadd.f32 %v3619_v46, %v1694_v24  ;;  %v1860_v27 = vadd.f32 %v3619_v46, %v1859_v25  ;;  %v1386_v28 = vpop.f32.mrf.mxu0  ;;  %v1546_v29 = vpop.f32.mrf.mxu1 }
 0x161   : > { %v1387_v30 = vadd.f32 %v3619_v46, %v1386_v28  ;;  %v1547_v31 = vadd.f32 %v3619_v46, %v1546_v29  ;;  %v3434_v28 = vld [vmem:[%s3578_s15 + $0x3a0] sm:$0xff] }
 0x162   : > { %v2115_v32 = vmax.f32 %v1695_v26, 0.0  ;;  %v2181_v33 = vmax.f32 %v1860_v27, 0.0  ;;  %v3401_v27 = vld [vmem:[%s3578_s15 + $0x298] sm:$0xff] }
 0x163   : > { %v1992_v34 = vmax.f32 %v1387_v30, 0.0  ;;  %v2056_v35 = vmax.f32 %v1547_v31, 0.0 }
 0x164   : > { %v2390_v36 = vadd.f32 %v2389_v19, %v2115_v32  ;;  %v2466_v37 = vadd.f32 %v2465_v20, %v2181_v33  ;;  %v3339_v20 = vld [vmem:[%s3578_s15 + $0xa8] sm:$0xff] }
 0x165   : > { %v2247_v38 = vadd.f32 %v2246_v21, %v1992_v34  ;;  %v2321_v39 = vadd.f32 %v2320_v23, %v2056_v35  ;;  %v3371_v21 = vld [vmem:[%s3578_s15 + $0x1a8] sm:$0xff] }
 0x167   : > { %v1696_v40 = vpop.f32.mrf.mxu2  ;;  %v1861_v41 = vpop.f32.mrf.mxu3 }
 0x168   : > { %v1697_v44 = vadd.f32 %v3619_v46, %v1696_v40  ;;  %v1862_v45 = vadd.f32 %v3619_v46, %v1861_v41  ;;  %v1389_v47 = vpop.f32.mrf.mxu0  ;;  %v1549_v48 = vpop.f32.mrf.mxu1  ;;  %v3797_v41 = vld [vmem:[%s4139_s2] ss:$0 sm:$0xff] }
 0x169   : > { %v1390_v53 = vadd.f32 %v3619_v46, %v1389_v47  ;;  %v1550_v54 = vadd.f32 %v3619_v46, %v1549_v48 }
 0x16a   : > { %v2116_v55 = vmax.f32 %v1697_v44, 0.0  ;;  %v2182_v56 = vmax.f32 %v1862_v45, 0.0 }
 0x16b   : > { %v1993_v57 = vmax.f32 %v1390_v53, 0.0  ;;  %v2057_v58 = vmax.f32 %v1550_v54, 0.0  ;;  %1428 = vmatmul.bf16.gmra.mxu0 %v3338_v42  ;;  %1588 = vmatmul.bf16.gmra.mxu1 %v3370_v43 }
 0x16c   : > { %v2391_v59 = vadd.f32 %v2390_v36, %v2116_v55  ;;  %v2467_v60 = vadd.f32 %v2466_v37, %v2182_v56  ;;  %1738 = vmatmul.bf16.gmra.mxu2 %v3400_v51  ;;  %1903 = vmatmul.bf16.gmra.mxu3 %v3433_v52 }
 0x16d   : > { %v2248_v63 = vadd.f32 %v2247_v38, %v1993_v57  ;;  %v2322_v0 = vadd.f32 %v2321_v39, %v2057_v58 }
 0x16f   : > { %v1699_v1 = vpop.f32.mrf.mxu2  ;;  %v1864_v2 = vpop.f32.mrf.mxu3 }
 0x170   : > { %v1700_v3 = vadd.f32 %v3619_v46, %v1699_v1  ;;  %v1865_v4 = vadd.f32 %v3619_v46, %v1864_v2  ;;  %v1391_v5 = vpop.f32.mrf.mxu0  ;;  %v1551_v6 = vpop.f32.mrf.mxu1 }
 0x171   : > { %v1392_v7 = vadd.f32 %v3619_v46, %v1391_v5  ;;  %v1552_v8 = vadd.f32 %v3619_v46, %v1551_v6  ;;  %v3435_v5 = vld [vmem:[%s3578_s15 + $0x3a8] sm:$0xff] }
 0x172   : > { %v2117_v9 = vmax.f32 %v1700_v3, 0.0  ;;  %v2183_v10 = vmax.f32 %v1865_v4, 0.0  ;;  %v3402_v4 = vld [vmem:[%s3578_s15 + $0x2a0] sm:$0xff] }
 0x173   : > { %v1994_v12 = vmax.f32 %v1392_v7, 0.0  ;;  %v2058_v13 = vmax.f32 %v1552_v8, 0.0 }
 0x174   : > { %v2392_v14 = vadd.f32 %v2391_v59, %v2117_v9  ;;  %v2468_v15 = vadd.f32 %v2467_v60, %v2183_v10  ;;  %v3340_v60 = vld [vmem:[%s3578_s15 + $0xb0] sm:$0xff] }
 0x175   : > { %v2249_v16 = vadd.f32 %v2248_v63, %v1994_v12  ;;  %v2323_v17 = vadd.f32 %v2322_v0, %v2058_v13  ;;  %v3372_v63 = vld [vmem:[%s3578_s15 + $0x1b0] sm:$0xff] }
 0x177   : > { %v1701_v18 = vpop.f32.mrf.mxu2  ;;  %v1866_v19 = vpop.f32.mrf.mxu3 }
 0x178   : > { %v1702_v23 = vadd.f32 %v3619_v46, %v1701_v18  ;;  %v1867_v24 = vadd.f32 %v3619_v46, %v1866_v19  ;;  %v1394_v25 = vpop.f32.mrf.mxu0  ;;  %v1554_v26 = vpop.f32.mrf.mxu1 }
 0x179   : > { %v1395_v29 = vadd.f32 %v3619_v46, %v1394_v25  ;;  %v1555_v30 = vadd.f32 %v3619_v46, %v1554_v26 }
 0x17a   : > { %v2118_v31 = vmax.f32 %v1702_v23, 0.0  ;;  %v2184_v32 = vmax.f32 %v1867_v24, 0.0 }
 0x17b   : > { %v1995_v33 = vmax.f32 %v1395_v29, 0.0  ;;  %v2059_v34 = vmax.f32 %v1555_v30, 0.0  ;;  %1433 = vmatmul.bf16.gmra.mxu0 %v3339_v20  ;;  %1593 = vmatmul.bf16.gmra.mxu1 %v3371_v21 }
 0x17c   : > { %v2393_v35 = vadd.f32 %v2392_v14, %v2118_v31  ;;  %v2469_v36 = vadd.f32 %v2468_v15, %v2184_v32  ;;  %1743 = vmatmul.bf16.gmra.mxu2 %v3401_v27  ;;  %1908 = vmatmul.bf16.gmra.mxu3 %v3434_v28 }
 0x17d   : > { %v2250_v37 = vadd.f32 %v2249_v16, %v1995_v33  ;;  %v2324_v38 = vadd.f32 %v2323_v17, %v2059_v34 }
 0x17f   : > { %v1704_v39 = vpop.f32.mrf.mxu2  ;;  %v1869_v40 = vpop.f32.mrf.mxu3 }
 0x180   : > { %v1705_v46 = vadd.f32 %v3797_v41, %v1704_v39  ;;  %v1870_v42 = vadd.f32 %v3797_v41, %v1869_v40  ;;  %v1396_v43 = vpop.f32.mrf.mxu0  ;;  %v1556_v44 = vpop.f32.mrf.mxu1 }
 0x181   : > { %v1397_v45 = vadd.f32 %v3797_v41, %v1396_v43  ;;  %v1557_v47 = vadd.f32 %v3797_v41, %v1556_v44  ;;  %v3403_v43 = vld [vmem:[%s3578_s15 + $0x2a8] sm:$0xff]  ;;  %v3436_v44 = vld [vmem:[%s3578_s15 + $0x3b0] sm:$0xff] }
 0x182   : > { %v2119_v48 = vmax.f32 %v1705_v46, 0.0  ;;  %v2185_v51 = vmax.f32 %v1870_v42, 0.0 }
 0x183   : > { %v1996_v52 = vmax.f32 %v1397_v45, 0.0  ;;  %v2060_v53 = vmax.f32 %v1557_v47, 0.0 }
 0x184   : > { %v2394_v54 = vadd.f32 %v2393_v35, %v2119_v48  ;;  %v2470_v55 = vadd.f32 %v2469_v36, %v2185_v51  ;;  %v3341_v36 = vld [vmem:[%s3578_s15 + $0xb8] sm:$0xff] }
 0x185   : > { %v2251_v56 = vadd.f32 %v2250_v37, %v1996_v52  ;;  %v2325_v57 = vadd.f32 %v2324_v38, %v2060_v53  ;;  %v3373_v37 = vld [vmem:[%s3578_s15 + $0x1b8] sm:$0xff]  ;;  %v3458_v38 = vld [vmem:[%s4140_s3 + $0x20] sm:$0xff] }
 0x186   : > { %2640 = vmatpush.bf16.msrb.mxu1 %v3458_v38 }
 0x187   : > { %v1706_v58 = vpop.f32.mrf.mxu2  ;;  %v1871_v59 = vpop.f32.mrf.mxu3 }
 0x188   : > { %v1707_v0 = vadd.f32 %v3797_v41, %v1706_v58  ;;  %v1872_v1 = vadd.f32 %v3797_v41, %v1871_v59  ;;  %v1399_v2 = vpop.f32.mrf.mxu0  ;;  %v1559_v3 = vpop.f32.mrf.mxu1 }
 0x189   : > { %v1400_v6 = vadd.f32 %v3797_v41, %v1399_v2  ;;  %v1560_v7 = vadd.f32 %v3797_v41, %v1559_v3 }
 0x18a   : > { %v2120_v8 = vmax.f32 %v1707_v0, 0.0  ;;  %v2186_v9 = vmax.f32 %v1872_v1, 0.0 }
 0x18b   : > { %v1997_v10 = vmax.f32 %v1400_v6, 0.0  ;;  %v2061_v12 = vmax.f32 %v1560_v7, 0.0  ;;  %1438 = vmatmul.bf16.gmra.mxu0 %v3340_v60  ;;  %1598 = vmatmul.bf16.gmra.mxu1 %v3372_v63 }
 0x18c   : > { %v2395_v13 = vadd.f32 %v2394_v54, %v2120_v8  ;;  %v2471_v14 = vadd.f32 %v2470_v55, %v2186_v9  ;;  %1748 = vmatmul.bf16.gmra.mxu2 %v3402_v4  ;;  %1913 = vmatmul.bf16.gmra.mxu3 %v3435_v5 }
 0x18d   : > { %v2252_v15 = vadd.f32 %v2251_v56, %v1997_v10  ;;  %v2326_v16 = vadd.f32 %v2325_v57, %v2061_v12 }
 0x18f   : > { %v1709_v17 = vpop.f32.mrf.mxu2  ;;  %v1874_v18 = vpop.f32.mrf.mxu3 }
 0x190   : > { %v1710_v19 = vadd.f32 %v3797_v41, %v1709_v17  ;;  %v1875_v20 = vadd.f32 %v3797_v41, %v1874_v18  ;;  %v1401_v21 = vpop.f32.mrf.mxu0  ;;  %v1561_v23 = vpop.f32.mrf.mxu1 }
 0x191   : > { %v1402_v24 = vadd.f32 %v3797_v41, %v1401_v21  ;;  %v1562_v25 = vadd.f32 %v3797_v41, %v1561_v23  ;;  %v3404_v21 = vld [vmem:[%s3578_s15 + $0x2b0] sm:$0xff]  ;;  %v3437_v23 = vld [vmem:[%s3578_s15 + $0x3b8] sm:$0xff] }
 0x192   : > { %v2121_v26 = vmax.f32 %v1710_v19, 0.0  ;;  %v2187_v27 = vmax.f32 %v1875_v20, 0.0 }
 0x193   : > { %v1998_v28 = vmax.f32 %v1402_v24, 0.0  ;;  %v2062_v29 = vmax.f32 %v1562_v25, 0.0 }
 0x194   : > { %v2396_v30 = vadd.f32 %v2395_v13, %v2121_v26  ;;  %v2472_v31 = vadd.f32 %v2471_v14, %v2187_v27 }
 0x195   : > { %v2253_v32 = vadd.f32 %v2252_v15, %v1998_v28  ;;  %v2327_v33 = vadd.f32 %v2326_v16, %v2062_v29  ;;  %v3342_v15 = vld [vmem:[%s3578_s15 + $0xc0] sm:$0xff] }
 0x196   : > { %v3374_v16 = vld [vmem:[%s3578_s15 + $0x1c0] sm:$0xff] }
 0x197   : > { %v1711_v34 = vpop.f32.mrf.mxu2  ;;  %v1876_v35 = vpop.f32.mrf.mxu3 }
 0x198   : > { %v1712_v39 = vadd.f32 %v3797_v41, %v1711_v34  ;;  %v1877_v40 = vadd.f32 %v3797_v41, %v1876_v35  ;;  %v1404_v46 = vpop.f32.mrf.mxu0  ;;  %v1564_v42 = vpop.f32.mrf.mxu1 }
 0x199   : > { %v1405_v45 = vadd.f32 %v3797_v41, %v1404_v46  ;;  %v1565_v47 = vadd.f32 %v3797_v41, %v1564_v42 }
 0x19a   : > { %v2122_v48 = vmax.f32 %v1712_v39, 0.0  ;;  %v2188_v51 = vmax.f32 %v1877_v40, 0.0 }
 0x19b   : > { %v1999_v52 = vmax.f32 %v1405_v45, 0.0  ;;  %v2063_v53 = vmax.f32 %v1565_v47, 0.0  ;;  %1443 = vmatmul.bf16.gmra.mxu0 %v3341_v36  ;;  %1603 = vmatmul.bf16.gmra.mxu1 %v3373_v37 }
 0x19c   : > { %v2397_v54 = vadd.f32 %v2396_v30, %v2122_v48  ;;  %v2473_v55 = vadd.f32 %v2472_v31, %v2188_v51  ;;  %1753 = vmatmul.bf16.gmra.mxu2 %v3403_v43  ;;  %1918 = vmatmul.bf16.gmra.mxu3 %v3436_v44 }
 0x19d   : > { %v2254_v56 = vadd.f32 %v2253_v32, %v1999_v52  ;;  %v2328_v57 = vadd.f32 %v2327_v33, %v2063_v53  ;;  %v3343_v53 = vld [vmem:[%s3578_s15 + $0xc8] sm:$0xff] }
 0x19f   : > { %v1714_v58 = vpop.f32.mrf.mxu2  ;;  %v1879_v59 = vpop.f32.mrf.mxu3 }
 0x1a0   : > { %v1715_v60 = vadd.f32 %v3797_v41, %v1714_v58  ;;  %v1880_v63 = vadd.f32 %v3797_v41, %v1879_v59  ;;  %v1406_v0 = vpop.f32.mrf.mxu0  ;;  %v1566_v1 = vpop.f32.mrf.mxu1  ;;  %v3405_v59 = vld [vmem:[%s3578_s15 + $0x2b8] sm:$0xff] }
 0x1a1   : > { %v1407_v2 = vadd.f32 %v3797_v41, %v1406_v0  ;;  %v1567_v3 = vadd.f32 %v3797_v41, %v1566_v1 }
 0x1a2   : > { %v2123_v4 = vmax.f32 %v1715_v60, 0.0  ;;  %v2189_v5 = vmax.f32 %v1880_v63, 0.0  ;;  %v3438_v60 = vld [vmem:[%s3578_s15 + $0x3c0] sm:$0xff] }
 0x1a3   : > { %v2000_v6 = vmax.f32 %v1407_v2, 0.0  ;;  %v2064_v7 = vmax.f32 %v1567_v3, 0.0 }
 0x1a4   : > { %v2398_v8 = vadd.f32 %v2397_v54, %v2123_v4  ;;  %v2474_v9 = vadd.f32 %v2473_v55, %v2189_v5  ;;  %v3375_v54 = vld [vmem:[%s3578_s15 + $0x1c8] sm:$0xff] }
 0x1a5   : > { %v3830_v10 = vadd.f32 %v2254_v56, %v2000_v6  ;;  %v3832_v12 = vadd.f32 %v2328_v57, %v2064_v7 }
 0x1a7   : > { %v1716_v13 = vpop.f32.mrf.mxu2  ;;  %v1881_v14 = vpop.f32.mrf.mxu3 }
 0x1a8   : > { %v1717_v17 = vadd.f32 %v3797_v41, %v1716_v13  ;;  %v1882_v18 = vadd.f32 %v3797_v41, %v1881_v14  ;;  %v1409_v19 = vpop.f32.mrf.mxu0  ;;  %v1569_v20 = vpop.f32.mrf.mxu1 }
 0x1a9   : > { %v1410_v28 = vadd.f32 %v3797_v41, %v1409_v19  ;;  %v1570_v29 = vadd.f32 %v3797_v41, %v1569_v20 }
 0x1aa   : > { %v2124_v24 = vmax.f32 %v1717_v17, 0.0  ;;  %v2190_v25 = vmax.f32 %v1882_v18, 0.0 }
 0x1ab   : > { %1448 = vmatmul.bf16.gmra.mxu0 %v3342_v15  ;;  %1608 = vmatmul.bf16.gmra.mxu1 %v3374_v16  ;;  %v2001_v36 = vmax.f32 %v1410_v28, 0.0  ;;  %v2065_v37 = vmax.f32 %v1570_v29, 0.0  ;;  %v3344_v29 = vld [vmem:[%s3578_s15 + $0xd0] sm:$0xff] }
 0x1ac   : > { %v2399_v26 = vadd.f32 %v2398_v8, %v2124_v24  ;;  %v2475_v27 = vadd.f32 %v2474_v9, %v2190_v25  ;;  %1758 = vmatmul.bf16.gmra.mxu2 %v3404_v21  ;;  %1923 = vmatmul.bf16.gmra.mxu3 %v3437_v23 }
 0x1af   : > { %v1719_v30 = vpop.f32.mrf.mxu2  ;;  %v1884_v31 = vpop.f32.mrf.mxu3 }
 0x1b0   : > { %v1720_v32 = vadd.f32 %v3797_v41, %v1719_v30  ;;  %v1885_v33 = vadd.f32 %v3797_v41, %v1884_v31  ;;  %v1411_v34 = vpop.f32.mrf.mxu0  ;;  %v1571_v35 = vpop.f32.mrf.mxu1  ;;  %v3376_v30 = vld [vmem:[%s3578_s15 + $0x1d0] sm:$0xff] }
 0x1b1   : > { %v1412_v38 = vadd.f32 %v3797_v41, %v1411_v34  ;;  %v1572_v39 = vadd.f32 %v3797_v41, %v1571_v35  ;;  %v3406_v35 = vld [vmem:[%s3578_s15 + $0x2c0] sm:$0xff] }
 0x1b2   : > { %v2125_v40 = vmax.f32 %v1720_v32, 0.0  ;;  %v2191_v46 = vmax.f32 %v1885_v33, 0.0 }
 0x1b3   : > { %v2002_v42 = vmax.f32 %v1412_v38, 0.0  ;;  %v2066_v43 = vmax.f32 %v1572_v39, 0.0 }
 0x1b4   : > { %v2400_v44 = vadd.f32 %v2399_v26, %v2125_v40  ;;  %v2476_v45 = vadd.f32 %v2475_v27, %v2191_v46 }
 0x1b5   : > { %v2262_v47 = vadd.f32 %v2002_v42, %v2001_v36  ;;  %v2336_v48 = vadd.f32 %v2066_v43, %v2065_v37  ;;  %v3439_v36 = vld [vmem:[%s3578_s15 + $0x3c8] sm:$0xff] }
 0x1b7   : > { %v1721_v51 = vpop.f32.mrf.mxu2  ;;  %v1886_v52 = vpop.f32.mrf.mxu3 }
 0x1b8   : > { %v1722_v55 = vadd.f32 %v3797_v41, %v1721_v51  ;;  %v1887_v56 = vadd.f32 %v3797_v41, %v1886_v52  ;;  %v1414_v57 = vpop.f32.mrf.mxu0  ;;  %v1574_v58 = vpop.f32.mrf.mxu1  ;;  %v3457_v51 = vld [vmem:[%s4140_s3 + $0x18] sm:$0xff] }
 0x1b9   : > { %v1415_v63 = vadd.f32 %v3797_v41, %v1414_v57  ;;  %v1575_v0 = vadd.f32 %v3797_v41, %v1574_v58  ;;  %2641 = vmatpush.bf16.msrb.mxu1 %v3457_v51 }
 0x1ba   : > { %v2126_v1 = vmax.f32 %v1722_v55, 0.0  ;;  %v2192_v2 = vmax.f32 %v1887_v56, 0.0 }
 0x1bb   : > { %v2003_v3 = vmax.f32 %v1415_v63, 0.0  ;;  %v2067_v4 = vmax.f32 %v1575_v0, 0.0  ;;  %1453 = vmatmul.bf16.gmra.mxu0 %v3343_v53  ;;  %1613 = vmatmul.bf16.gmra.mxu1 %v3375_v54 }
 0x1bc   : > { %v2401_v5 = vadd.f32 %v2400_v44, %v2126_v1  ;;  %v3854_v6 = vadd.f32 %v2476_v45, %v2192_v2  ;;  %1763 = vmatmul.bf16.gmra.mxu2 %v3405_v59  ;;  %1928 = vmatmul.bf16.gmra.mxu3 %v3438_v60 }
 0x1bd   : > { %v2263_v7 = vadd.f32 %v2262_v47, %v2003_v3  ;;  %v2337_v8 = vadd.f32 %v2336_v48, %v2067_v4 }
 0x1bf   : > { %v1724_v9 = vpop.f32.mrf.mxu2  ;;  %v1889_v13 = vpop.f32.mrf.mxu3 }
 0x1c0   : > { %v1725_v14 = vadd.f32 %v3797_v41, %v1724_v9  ;;  %v1416_v15 = vpop.f32.mrf.mxu0  ;;  %v1576_v16 = vpop.f32.mrf.mxu1  ;;  %v1890_v26 = vadd.f32 %v3797_v41, %v1889_v13 }
 0x1c1   : > { %v1417_v17 = vadd.f32 %v3797_v41, %v1416_v15  ;;  %v1577_v18 = vadd.f32 %v3797_v41, %v1576_v16  ;;  %v3407_v15 = vld [vmem:[%s3578_s15 + $0x2c8] sm:$0xff]  ;;  %v3440_v16 = vld [vmem:[%s3578_s15 + $0x3d0] sm:$0xff] }
 0x1c2   : > { %v2127_v19 = vmax.f32 %v1725_v14, 0.0  ;;  %v2193_v39 = vmax.f32 %v1890_v26, 0.0 }
 0x1c3   : > { %v2004_v20 = vmax.f32 %v1417_v17, 0.0  ;;  %v2068_v21 = vmax.f32 %v1577_v18, 0.0 }
 0x1c4   : > { %v2402_v23 = vadd.f32 %v2401_v5, %v2127_v19  ;;  %v3345_v5 = vld [vmem:[%s3578_s15 + $0xd8] sm:$0xff] }
 0x1c5   : > { %v2264_v24 = vadd.f32 %v2263_v7, %v2004_v20  ;;  %v2338_v25 = vadd.f32 %v2337_v8, %v2068_v21  ;;  %v3377_v7 = vld [vmem:[%s3578_s15 + $0x1d8] sm:$0xff] }
 0x1c7   : > { %v1726_v27 = vpop.f32.mrf.mxu2  ;;  %v1891_v28 = vpop.f32.mrf.mxu3 }
 0x1c8   : > { %v1727_v31 = vadd.f32 %v3797_v41, %v1726_v27  ;;  %v1892_v32 = vadd.f32 %v3797_v41, %v1891_v28  ;;  %v1419_v33 = vpop.f32.mrf.mxu0  ;;  %v1579_v34 = vpop.f32.mrf.mxu1 }
 0x1c9   : > { %v1420_v37 = vadd.f32 %v3797_v41, %v1419_v33  ;;  %v1580_v38 = vadd.f32 %v3797_v41, %v1579_v34 }
 0x1ca   : > { %v2128_v40 = vmax.f32 %v1727_v31, 0.0  ;;  %v2194_v46 = vmax.f32 %v1892_v32, 0.0 }
 0x1cb   : > { %v2005_v42 = vmax.f32 %v1420_v37, 0.0  ;;  %v2069_v43 = vmax.f32 %v1580_v38, 0.0  ;;  %1458 = vmatmul.bf16.gmra.mxu0 %v3344_v29  ;;  %1618 = vmatmul.bf16.gmra.mxu1 %v3376_v30 }
 0x1cc   : > { %v3868_v44 = vadd.f32 %v2402_v23, %v2128_v40  ;;  %v2484_v45 = vadd.f32 %v2194_v46, %v2193_v39  ;;  %1768 = vmatmul.bf16.gmra.mxu2 %v3406_v35  ;;  %1933 = vmatmul.bf16.gmra.mxu3 %v3439_v36 }
 0x1cd   : > { %v2265_v47 = vadd.f32 %v2264_v24, %v2005_v42  ;;  %v2339_v48 = vadd.f32 %v2338_v25, %v2069_v43 }
 0x1cf   : > { %v1729_v52 = vpop.f32.mrf.mxu2  ;;  %v1894_v53 = vpop.f32.mrf.mxu3 }
 0x1d0   : > { %v1895_v54 = vadd.f32 %v3797_v41, %v1894_v53  ;;  %v1421_v55 = vpop.f32.mrf.mxu0  ;;  %v1581_v56 = vpop.f32.mrf.mxu1  ;;  %v1730_v2 = vadd.f32 %v3797_v41, %v1729_v52  ;;  %v3346_v52 = vld [vmem:[%s3578_s15 + $0xe0] sm:$0xff] }
 0x1d1   : > { %v1422_v57 = vadd.f32 %v3797_v41, %v1421_v55  ;;  %v1582_v58 = vadd.f32 %v3797_v41, %v1581_v56  ;;  %v3378_v53 = vld [vmem:[%s3578_s15 + $0x1e0] sm:$0xff] }
 0x1d2   : > { %v2195_v59 = vmax.f32 %v1895_v54, 0.0  ;;  %v2129_v20 = vmax.f32 %v1730_v2, 0.0 }
 0x1d3   : > { %v2006_v60 = vmax.f32 %v1422_v57, 0.0  ;;  %v2070_v1 = vmax.f32 %v1582_v58, 0.0  ;;  %v3408_v58 = vld [vmem:[%s3578_s15 + $0x2d0] sm:$0xff] }
 0x1d4   : > { %v2485_v63 = vadd.f32 %v2484_v45, %v2195_v59  ;;  %v3441_v59 = vld [vmem:[%s3578_s15 + $0x3d8] sm:$0xff] }
 0x1d5   : > { %v2266_v0 = vadd.f32 %v2265_v47, %v2006_v60  ;;  %v2340_v17 = vadd.f32 %v2339_v48, %v2070_v1 }
 0x1d7   : > { %v1731_v3 = vpop.f32.mrf.mxu2  ;;  %v1896_v4 = vpop.f32.mrf.mxu3 }
 0x1d8   : > { %v1732_v8 = vadd.f32 %v3797_v41, %v1731_v3  ;;  %v1897_v9 = vadd.f32 %v3797_v41, %v1896_v4  ;;  %v1424_v13 = vpop.f32.mrf.mxu0  ;;  %v1584_v14 = vpop.f32.mrf.mxu1 }
 0x1d9   : > { %v1425_v18 = vadd.f32 %v3797_v41, %v1424_v13  ;;  %v1585_v19 = vadd.f32 %v3797_v41, %v1584_v14 }
 0x1da   : > { %v2130_v21 = vmax.f32 %v1732_v8, 0.0  ;;  %v2196_v23 = vmax.f32 %v1897_v9, 0.0 }
 0x1db   : > { %v2007_v24 = vmax.f32 %v1425_v18, 0.0  ;;  %v2071_v25 = vmax.f32 %v1585_v19, 0.0  ;;  %1463 = vmatmul.bf16.gmra.mxu0 %v3345_v5  ;;  %1623 = vmatmul.bf16.gmra.mxu1 %v3377_v7 }
 0x1dc   : > { %v2410_v26 = vadd.f32 %v2130_v21, %v2129_v20  ;;  %v2486_v27 = vadd.f32 %v2485_v63, %v2196_v23  ;;  %1773 = vmatmul.bf16.gmra.mxu2 %v3407_v15  ;;  %1938 = vmatmul.bf16.gmra.mxu3 %v3440_v16 }
 0x1dd   : > { %v2267_v28 = vadd.f32 %v2266_v0, %v2007_v24  ;;  %v2341_v29 = vadd.f32 %v2340_v17, %v2071_v25 }
 0x1df   : > { %v1734_v30 = vpop.f32.mrf.mxu2  ;;  %v1899_v31 = vpop.f32.mrf.mxu3 }
 0x1e0   : > { %v1735_v32 = vadd.f32 %v3797_v41, %v1734_v30  ;;  %v1900_v33 = vadd.f32 %v3797_v41, %v1899_v31  ;;  %v1426_v34 = vpop.f32.mrf.mxu0  ;;  %v1586_v35 = vpop.f32.mrf.mxu1  ;;  %v3347_v31 = vld [vmem:[%s3578_s15 + $0xe8] sm:$0xff] }
 0x1e1   : > { %v1427_v36 = vadd.f32 %v3797_v41, %v1426_v34  ;;  %v1587_v37 = vadd.f32 %v3797_v41, %v1586_v35 }
 0x1e2   : > { %v2131_v38 = vmax.f32 %v1735_v32, 0.0  ;;  %v2197_v39 = vmax.f32 %v1900_v33, 0.0  ;;  %v3379_v32 = vld [vmem:[%s3578_s15 + $0x1e8] sm:$0xff] }
 0x1e3   : > { %v2008_v40 = vmax.f32 %v1427_v36, 0.0  ;;  %v2072_v46 = vmax.f32 %v1587_v37, 0.0  ;;  %v3409_v37 = vld [vmem:[%s3578_s15 + $0x2d8] sm:$0xff] }
 0x1e4   : > { %v2411_v42 = vadd.f32 %v2410_v26, %v2131_v38  ;;  %v2487_v43 = vadd.f32 %v2486_v27, %v2197_v39  ;;  %v3442_v38 = vld [vmem:[%s3578_s15 + $0x3e0] sm:$0xff] }
 0x1e5   : > { %v2268_v45 = vadd.f32 %v2267_v28, %v2008_v40  ;;  %v2342_v47 = vadd.f32 %v2341_v29, %v2072_v46 }
 0x1e7   : > { %v1736_v48 = vpop.f32.mrf.mxu2  ;;  %v1901_v51 = vpop.f32.mrf.mxu3 }
 0x1e8   : > { %v1737_v54 = vadd.f32 %v3797_v41, %v1736_v48  ;;  %v1902_v55 = vadd.f32 %v3797_v41, %v1901_v51  ;;  %v1429_v56 = vpop.f32.mrf.mxu0  ;;  %v1589_v57 = vpop.f32.mrf.mxu1 }
 0x1e9   : > { %v1430_v60 = vadd.f32 %v3797_v41, %v1429_v56  ;;  %v1590_v63 = vadd.f32 %v3797_v41, %v1589_v57 }
 0x1ea   : > { %v2132_v0 = vmax.f32 %v1737_v54, 0.0  ;;  %v2198_v1 = vmax.f32 %v1902_v55, 0.0 }
 0x1eb   : > { %v2009_v2 = vmax.f32 %v1430_v60, 0.0  ;;  %v2073_v3 = vmax.f32 %v1590_v63, 0.0  ;;  %1468 = vmatmul.bf16.gmra.mxu0 %v3346_v52  ;;  %1628 = vmatmul.bf16.gmra.mxu1 %v3378_v53 }
 0x1ec   : > { %v2412_v4 = vadd.f32 %v2411_v42, %v2132_v0  ;;  %v2488_v5 = vadd.f32 %v2487_v43, %v2198_v1  ;;  %1778 = vmatmul.bf16.gmra.mxu2 %v3408_v58  ;;  %1943 = vmatmul.bf16.gmra.mxu3 %v3441_v59 }
 0x1ed   : > { %v2269_v7 = vadd.f32 %v2268_v45, %v2009_v2  ;;  %v2343_v8 = vadd.f32 %v2342_v47, %v2073_v3 }
 0x1ef   : > { %v1739_v9 = vpop.f32.mrf.mxu2  ;;  %v1904_v13 = vpop.f32.mrf.mxu3 }
 0x1f0   : > { %v1740_v14 = vadd.f32 %v3797_v41, %v1739_v9  ;;  %v1905_v15 = vadd.f32 %v3797_v41, %v1904_v13  ;;  %v1431_v16 = vpop.f32.mrf.mxu0  ;;  %v1591_v17 = vpop.f32.mrf.mxu1 }
 0x1f1   : > { %v1432_v18 = vadd.f32 %v3797_v41, %v1431_v16  ;;  %v1592_v19 = vadd.f32 %v3797_v41, %v1591_v17 }
 0x1f2   : > { %v2133_v20 = vmax.f32 %v1740_v14, 0.0  ;;  %v2199_v21 = vmax.f32 %v1905_v15, 0.0  ;;  %v3348_v14 = vld [vmem:[%s3578_s15 + $0xf0] sm:$0xff] }
 0x1f3   : > { %v2010_v23 = vmax.f32 %v1432_v18, 0.0  ;;  %v2074_v24 = vmax.f32 %v1592_v19, 0.0  ;;  %v3410_v19 = vld [vmem:[%s3578_s15 + $0x2e0] sm:$0xff] }
 0x1f4   : > { %v2413_v25 = vadd.f32 %v2412_v4, %v2133_v20  ;;  %v2489_v26 = vadd.f32 %v2488_v5, %v2199_v21  ;;  %v3443_v20 = vld [vmem:[%s3578_s15 + $0x3e8] sm:$0xff] }
 0x1f5   : > { %v2270_v27 = vadd.f32 %v2269_v7, %v2010_v23  ;;  %v2344_v28 = vadd.f32 %v2343_v8, %v2074_v24  ;;  %v3456_v8 = vld [vmem:[%s4140_s3 + $0x10] sm:$0xff] }
 0x1f6   : > { %2642 = vmatpush.bf16.msrb.mxu1 %v3456_v8 }
 0x1f7   : > { %v1741_v29 = vpop.f32.mrf.mxu2  ;;  %v1906_v30 = vpop.f32.mrf.mxu3 }
 0x1f8   : > { %v1742_v33 = vadd.f32 %v3797_v41, %v1741_v29  ;;  %v1907_v34 = vadd.f32 %v3797_v41, %v1906_v30  ;;  %v1434_v35 = vpop.f32.mrf.mxu0  ;;  %v1594_v36 = vpop.f32.mrf.mxu1 }
 0x1f9   : > { %v1435_v39 = vadd.f32 %v3797_v41, %v1434_v35  ;;  %v1595_v40 = vadd.f32 %v3797_v41, %v1594_v36 }
 0x1fa   : > { %v2134_v46 = vmax.f32 %v1742_v33, 0.0  ;;  %v2200_v42 = vmax.f32 %v1907_v34, 0.0 }
 0x1fb   : > { %v2011_v43 = vmax.f32 %v1435_v39, 0.0  ;;  %v2075_v45 = vmax.f32 %v1595_v40, 0.0  ;;  %1473 = vmatmul.bf16.gmra.mxu0 %v3347_v31  ;;  %1633 = vmatmul.bf16.gmra.mxu1 %v3379_v32 }
 0x1fc   : > { %v2414_v47 = vadd.f32 %v2413_v25, %v2134_v46  ;;  %v2490_v48 = vadd.f32 %v2489_v26, %v2200_v42  ;;  %1783 = vmatmul.bf16.gmra.mxu2 %v3409_v37  ;;  %1948 = vmatmul.bf16.gmra.mxu3 %v3442_v38 }
 0x1fd   : > { %v2271_v51 = vadd.f32 %v2270_v27, %v2011_v43  ;;  %v2345_v52 = vadd.f32 %v2344_v28, %v2075_v45 }
 0x1ff   : > { %v1744_v53 = vpop.f32.mrf.mxu2  ;;  %v1909_v54 = vpop.f32.mrf.mxu3 }
 0x200   : > { %v1745_v55 = vadd.f32 %v3797_v41, %v1744_v53  ;;  %v1910_v56 = vadd.f32 %v3797_v41, %v1909_v54  ;;  %v1436_v57 = vpop.f32.mrf.mxu0  ;;  %v1596_v58 = vpop.f32.mrf.mxu1  ;;  %v3349_v54 = vld [vmem:[%s3578_s15 + $0xf8] sm:$0xff] }
 0x201   : > { %v1437_v59 = vadd.f32 %v3797_v41, %v1436_v57  ;;  %v1597_v60 = vadd.f32 %v3797_v41, %v1596_v58 }
 0x202   : > { %v2135_v63 = vmax.f32 %v1745_v55, 0.0  ;;  %v2201_v0 = vmax.f32 %v1910_v56, 0.0 }
 0x203   : > { %v2012_v1 = vmax.f32 %v1437_v59, 0.0  ;;  %v2076_v2 = vmax.f32 %v1597_v60, 0.0  ;;  %v3411_v59 = vld [vmem:[%s3578_s15 + $0x2e8] sm:$0xff]  ;;  %v3444_v60 = vld [vmem:[%s3578_s15 + $0x3f0] sm:$0xff] }
 0x204   : > { %v2415_v3 = vadd.f32 %v2414_v47, %v2135_v63  ;;  %v2491_v4 = vadd.f32 %v2490_v48, %v2201_v0 }
 0x205   : > { %v2272_v5 = vadd.f32 %v2271_v51, %v2012_v1  ;;  %v2346_v7 = vadd.f32 %v2345_v52, %v2076_v2 }
 0x207   : > { %v1746_v9 = vpop.f32.mrf.mxu2  ;;  %v1911_v13 = vpop.f32.mrf.mxu3 }
 0x208   : > { %v1747_v15 = vadd.f32 %v3797_v41, %v1746_v9  ;;  %v1912_v16 = vadd.f32 %v3797_v41, %v1911_v13  ;;  %v1439_v17 = vpop.f32.mrf.mxu0  ;;  %v1599_v18 = vpop.f32.mrf.mxu1 }
 0x209   : > { %v1440_v21 = vadd.f32 %v3797_v41, %v1439_v17  ;;  %v1600_v23 = vadd.f32 %v3797_v41, %v1599_v18 }
 0x20a   : > { %v2136_v24 = vmax.f32 %v1747_v15, 0.0  ;;  %v2202_v25 = vmax.f32 %v1912_v16, 0.0 }
 0x20b   : > { %v2013_v26 = vmax.f32 %v1440_v21, 0.0  ;;  %v2077_v27 = vmax.f32 %v1600_v23, 0.0  ;;  %1478 = vmatmul.bf16.gmra.mxu0 %v3348_v14 }
 0x20c   : > { %v2416_v28 = vadd.f32 %v2415_v3, %v2136_v24  ;;  %v2492_v29 = vadd.f32 %v2491_v4, %v2202_v25  ;;  %1788 = vmatmul.bf16.gmra.mxu2 %v3410_v19  ;;  %1953 = vmatmul.bf16.gmra.mxu3 %v3443_v20 }
 0x20d   : > { %v2273_v30 = vadd.f32 %v2272_v5, %v2013_v26  ;;  %v2347_v31 = vadd.f32 %v2346_v7, %v2077_v27 }
 0x20f   : > { %v1749_v32 = vpop.f32.mrf.mxu2  ;;  %v1914_v33 = vpop.f32.mrf.mxu3 }
 0x210   : > { %v1750_v34 = vadd.f32 %v3797_v41, %v1749_v32  ;;  %v1915_v35 = vadd.f32 %v3797_v41, %v1914_v33  ;;  %v1441_v36 = vpop.f32.mrf.mxu0  ;;  %v1601_v37 = vpop.f32.mrf.mxu1 }
 0x211   : > { %v1442_v38 = vadd.f32 %v3797_v41, %v1441_v36  ;;  %v1602_v39 = vadd.f32 %v3797_v41, %v1601_v37  ;;  %v3412_v36 = vld [vmem:[%s3578_s15 + $0x2f0] sm:$0xff]  ;;  %v3445_v37 = vld [vmem:[%s3578_s15 + $0x3f8] sm:$0xff] }
 0x212   : > { %v2137_v40 = vmax.f32 %v1750_v34, 0.0  ;;  %v2203_v46 = vmax.f32 %v1915_v35, 0.0 }
 0x213   : > { %v2014_v42 = vmax.f32 %v1442_v38, 0.0  ;;  %v2078_v43 = vmax.f32 %v1602_v39, 0.0 }
 0x214   : > { %v2417_v45 = vadd.f32 %v2416_v28, %v2137_v40  ;;  %v2493_v47 = vadd.f32 %v2492_v29, %v2203_v46 }
 0x215   : > { %v2274_v48 = vadd.f32 %v2273_v30, %v2014_v42  ;;  %v2348_v51 = vadd.f32 %v2347_v31, %v2078_v43 }
 0x217   : > { %v1751_v52 = vpop.f32.mrf.mxu2  ;;  %v1916_v53 = vpop.f32.mrf.mxu3 }
 0x218   : > { %v1752_v55 = vadd.f32 %v3797_v41, %v1751_v52  ;;  %v1917_v56 = vadd.f32 %v3797_v41, %v1916_v53  ;;  %v1444_v57 = vpop.f32.mrf.mxu0  ;;  %v1604_v58 = vpop.f32.mrf.mxu1 }
 0x219   : > { %v1445_v63 = vadd.f32 %v3797_v41, %v1444_v57  ;;  %v1605_v0 = vadd.f32 %v3797_v41, %v1604_v58 }
 0x21a   : > { %v2138_v1 = vmax.f32 %v1752_v55, 0.0  ;;  %v2204_v2 = vmax.f32 %v1917_v56, 0.0 }
 0x21b   : > { %v2015_v3 = vmax.f32 %v1445_v63, 0.0  ;;  %v2079_v4 = vmax.f32 %v1605_v0, 0.0  ;;  %1483 = vmatmul.bf16.gmra.mxu0 %v3349_v54 }
 0x21c   : > { %v2418_v5 = vadd.f32 %v2417_v45, %v2138_v1  ;;  %v2494_v7 = vadd.f32 %v2493_v47, %v2204_v2  ;;  %1793 = vmatmul.bf16.gmra.mxu2 %v3411_v59  ;;  %1958 = vmatmul.bf16.gmra.mxu3 %v3444_v60 }
 0x21d   : > { %v2275_v8 = vadd.f32 %v2274_v48, %v2015_v3  ;;  %v2349_v9 = vadd.f32 %v2348_v51, %v2079_v4 }
 0x21f   : > { %v1754_v13 = vpop.f32.mrf.mxu2  ;;  %v1919_v14 = vpop.f32.mrf.mxu3 }
 0x220   : > { %v1755_v15 = vadd.f32 %v3797_v41, %v1754_v13  ;;  %v1920_v16 = vadd.f32 %v3797_v41, %v1919_v14  ;;  %v1446_v17 = vpop.f32.mrf.mxu0  ;;  %v1606_v18 = vpop.f32.mrf.mxu1 }
 0x221   : > { %v1447_v19 = vadd.f32 %v3797_v41, %v1446_v17  ;;  %v1607_v20 = vadd.f32 %v3797_v41, %v1606_v18 }
 0x222   : > { %v2139_v21 = vmax.f32 %v1755_v15, 0.0  ;;  %v2205_v23 = vmax.f32 %v1920_v16, 0.0 }
 0x223   : > { %v2016_v24 = vmax.f32 %v1447_v19, 0.0  ;;  %v2080_v25 = vmax.f32 %v1607_v20, 0.0 }
 0x224   : > { %v2419_v26 = vadd.f32 %v2418_v5, %v2139_v21  ;;  %v2495_v27 = vadd.f32 %v2494_v7, %v2205_v23 }
 0x225   : > { %v2276_v28 = vadd.f32 %v2275_v8, %v2016_v24  ;;  %v2350_v29 = vadd.f32 %v2349_v9, %v2080_v25 }
 0x227   : > { %v1756_v30 = vpop.f32.mrf.mxu2  ;;  %v1921_v31 = vpop.f32.mrf.mxu3 }
 0x228   : > { %v1757_v32 = vadd.f32 %v3797_v41, %v1756_v30  ;;  %v1922_v33 = vadd.f32 %v3797_v41, %v1921_v31  ;;  %v1449_v34 = vpop.f32.mrf.mxu0  ;;  %v1609_v35 = vpop.f32.mrf.mxu1 }
 0x229   : > { %v1450_v38 = vadd.f32 %v3797_v41, %v1449_v34  ;;  %v1610_v39 = vadd.f32 %v3797_v41, %v1609_v35  ;;  %v3455_v34 = vld [vmem:[%s4140_s3 + $0x8] sm:$0xff] }
 0x22a   : > { %v2140_v40 = vmax.f32 %v1757_v32, 0.0  ;;  %v2206_v46 = vmax.f32 %v1922_v33, 0.0  ;;  %2643 = vmatpush.bf16.msrb.mxu1 %v3455_v34 }
 0x22b   : > { %v2017_v42 = vmax.f32 %v1450_v38, 0.0  ;;  %v2081_v43 = vmax.f32 %v1610_v39, 0.0 }
 0x22c   : > { %v2420_v45 = vadd.f32 %v2419_v26, %v2140_v40  ;;  %v2496_v47 = vadd.f32 %v2495_v27, %v2206_v46  ;;  %1798 = vmatmul.bf16.gmra.mxu2 %v3412_v36  ;;  %1963 = vmatmul.bf16.gmra.mxu3 %v3445_v37 }
 0x22d   : > { %v2277_v48 = vadd.f32 %v2276_v28, %v2017_v42  ;;  %v3944_v51 = vadd.f32 %v2350_v29, %v2081_v43 }
 0x22f   : > { %v1759_v52 = vpop.f32.mrf.mxu2  ;;  %v1924_v53 = vpop.f32.mrf.mxu3 }
 0x230   : > { %v1760_v54 = vadd.f32 %v3797_v41, %v1759_v52  ;;  %v1925_v55 = vadd.f32 %v3797_v41, %v1924_v53  ;;  %v1451_v56 = vpop.f32.mrf.mxu0  ;;  %v3948_v57 = vpop.f32.mrf.mxu1 }
 0x231   : > { %v1452_v58 = vadd.f32 %v3797_v41, %v1451_v56 }
 0x232   : > { %v2141_v59 = vmax.f32 %v1760_v54, 0.0  ;;  %v2207_v60 = vmax.f32 %v1925_v55, 0.0 }
 0x233   : > { %v2018_v63 = vmax.f32 %v1452_v58, 0.0 }
 0x234   : > { %v2421_v0 = vadd.f32 %v2420_v45, %v2141_v59  ;;  %v2497_v1 = vadd.f32 %v2496_v47, %v2207_v60 }
 0x235   : > { %v2278_v2 = vadd.f32 %v2277_v48, %v2018_v63 }
 0x237   : > { %v1761_v3 = vpop.f32.mrf.mxu2  ;;  %v1926_v4 = vpop.f32.mrf.mxu3 }
 0x238   : > { %v1762_v5 = vadd.f32 %v3797_v41, %v1761_v3  ;;  %v1927_v7 = vadd.f32 %v3797_v41, %v1926_v4  ;;  %v1454_v8 = vpop.f32.mrf.mxu0  ;;  %v3953_v9 = vpop.f32.mrf.mxu1 }
 0x239   : > { %v1455_v13 = vadd.f32 %v3797_v41, %v1454_v8 }
 0x23a   : > { %v2142_v14 = vmax.f32 %v1762_v5, 0.0  ;;  %v2208_v15 = vmax.f32 %v1927_v7, 0.0 }
 0x23b   : > { %v2019_v16 = vmax.f32 %v1455_v13, 0.0 }
 0x23c   : > { %v2422_v17 = vadd.f32 %v2421_v0, %v2142_v14  ;;  %v2498_v18 = vadd.f32 %v2497_v1, %v2208_v15 }
 0x23d   : > { %v2279_v19 = vadd.f32 %v2278_v2, %v2019_v16 }
 0x23f   : > { %v1764_v20 = vpop.f32.mrf.mxu2  ;;  %v1929_v21 = vpop.f32.mrf.mxu3 }
 0x240   : > { %v1765_v23 = vadd.f32 %v3797_v41, %v1764_v20  ;;  %v1930_v24 = vadd.f32 %v3797_v41, %v1929_v21  ;;  %v1456_v25 = vpop.f32.mrf.mxu0  ;;  %v1616_v26 = vpop.f32.mrf.mxu1 }
 0x241   : > { %v1457_v27 = vadd.f32 %v3797_v41, %v1456_v25 }
 0x242   : > { %v2143_v28 = vmax.f32 %v1765_v23, 0.0  ;;  %v2209_v29 = vmax.f32 %v1930_v24, 0.0 }
 0x243   : > { %v2020_v30 = vmax.f32 %v1457_v27, 0.0 }
 0x244   : > { %v2423_v31 = vadd.f32 %v2422_v17, %v2143_v28  ;;  %v2499_v32 = vadd.f32 %v2498_v18, %v2209_v29 }
 0x245   : > { %v2280_v33 = vadd.f32 %v2279_v19, %v2020_v30 }
 0x247   : > { %v1766_v35 = vpop.f32.mrf.mxu2  ;;  %v1931_v36 = vpop.f32.mrf.mxu3 }
 0x248   : > { %v1767_v37 = vadd.f32 %v3797_v41, %v1766_v35  ;;  %v1932_v38 = vadd.f32 %v3797_v41, %v1931_v36  ;;  %v1459_v39 = vpop.f32.mrf.mxu0  ;;  %v1619_v40 = vpop.f32.mrf.mxu1 }
 0x249   : > { %v1460_v46 = vadd.f32 %v3797_v41, %v1459_v39 }
 0x24a   : > { %v2144_v42 = vmax.f32 %v1767_v37, 0.0  ;;  %v2210_v43 = vmax.f32 %v1932_v38, 0.0 }
 0x24b   : > { %v2021_v45 = vmax.f32 %v1460_v46, 0.0 }
 0x24c   : > { %v2424_v47 = vadd.f32 %v2423_v31, %v2144_v42  ;;  %v2500_v48 = vadd.f32 %v2499_v32, %v2210_v43 }
 0x24d   : > { %v3965_v52 = vadd.f32 %v2280_v33, %v2021_v45 }
 0x24f   : > { %v1769_v53 = vpop.f32.mrf.mxu2  ;;  %v1934_v54 = vpop.f32.mrf.mxu3 }
 0x250   : > { %v1770_v55 = vadd.f32 %v3797_v41, %v1769_v53  ;;  %v1935_v56 = vadd.f32 %v3797_v41, %v1934_v54  ;;  %v3969_v58 = vpop.f32.mrf.mxu0  ;;  %v1621_v59 = vpop.f32.mrf.mxu1 }
 0x252   : > { %v2145_v60 = vmax.f32 %v1770_v55, 0.0  ;;  %v2211_v63 = vmax.f32 %v1935_v56, 0.0 }
 0x254   : > { %v2425_v0 = vadd.f32 %v2424_v47, %v2145_v60  ;;  %v2501_v1 = vadd.f32 %v2500_v48, %v2211_v63 }
 0x257   : > { %v1771_v2 = vpop.f32.mrf.mxu2  ;;  %v1936_v3 = vpop.f32.mrf.mxu3 }
 0x258   : > { %v1772_v4 = vadd.f32 %v3797_v41, %v1771_v2  ;;  %v1937_v5 = vadd.f32 %v3797_v41, %v1936_v3  ;;  %v3973_v7 = vpop.f32.mrf.mxu0  ;;  %v1624_v8 = vpop.f32.mrf.mxu1 }
 0x25a   : > { %v2146_v13 = vmax.f32 %v1772_v4, 0.0  ;;  %v2212_v14 = vmax.f32 %v1937_v5, 0.0 }
 0x25c   : > { %v2426_v15 = vadd.f32 %v2425_v0, %v2146_v13  ;;  %v2502_v16 = vadd.f32 %v2501_v1, %v2212_v14 }
 0x25f   : > { %v1774_v17 = vpop.f32.mrf.mxu2  ;;  %v1939_v18 = vpop.f32.mrf.mxu3 }
 0x260   : > { %v1775_v19 = vadd.f32 %v3797_v41, %v1774_v17  ;;  %v1940_v20 = vadd.f32 %v3797_v41, %v1939_v18  ;;  %v3977_v21 = vpop.f32.mrf.mxu0  ;;  %v1626_v23 = vpop.f32.mrf.mxu1  ;;  %v3992_v41 = vld [vmem:[%s4139_s2] ss:$0 sm:$0xff] }
 0x261   : > { %v1612_v33 = vadd.f32 %v3992_v41, %v3948_v57  ;;  %v1615_v34 = vadd.f32 %v3992_v41, %v3953_v9  ;;  %v1617_v36 = vadd.f32 %v3992_v41, %v1616_v26  ;;  %v1620_v38 = vadd.f32 %v3992_v41, %v1619_v40 }
 0x262   : > { %v2147_v24 = vmax.f32 %v1775_v19, 0.0  ;;  %v2213_v25 = vmax.f32 %v1940_v20, 0.0  ;;  %v1622_v57 = vadd.f32 %v3992_v41, %v1621_v59  ;;  %v1625_v53 = vadd.f32 %v3992_v41, %v1624_v8  ;;  %v3454_v19 = vld [vmem:[%s4140_s3] sm:$0xff] }
 0x263   : > { %v2082_v35 = vmax.f32 %v1612_v33, 0.0  ;;  %v2083_v37 = vmax.f32 %v1615_v34, 0.0  ;;  %v2084_v47 = vmax.f32 %v1617_v36, 0.0  ;;  %v2085_v9 = vmax.f32 %v1620_v38, 0.0  ;;  %2644 = vmatpush.bf16.msrb.mxu1 %v3454_v19 }
 0x264   : > { %v3979_v27 = vadd.f32 %v2426_v15, %v2147_v24  ;;  %v3981_v28 = vadd.f32 %v2502_v16, %v2213_v25  ;;  %v2086_v54 = vmax.f32 %v1622_v57, 0.0  ;;  %v1627_v40 = vadd.f32 %v3992_v41, %v1626_v23 }
 0x265   : > { %v2352_v45 = vadd.f32 %v3944_v51, %v2082_v35  ;;  %v2087_v56 = vmax.f32 %v1625_v53, 0.0  ;;  %v1640_v24 = vadd.f32 %v3992_v41, %v3623_v49  ;;  %v1642_v33 = vadd.f32 %v3992_v41, %v3629_v61 }
 0x266   : > { %v2088_v59 = vmax.f32 %v1627_v40, 0.0  ;;  %v1462_v61 = vadd.f32 %v3992_v41, %v3969_v58  ;;  %v2256_v40 = vrot.slane %v3830_v10, 4 }
 0x267   : > { %v3983_v29 = vpop.f32.mrf.mxu2  ;;  %v3985_v30 = vpop.f32.mrf.mxu3  ;;  %v2353_v48 = vadd.f32 %v2352_v45, %v2083_v37  ;;  %v2093_v36 = vmax.f32 %v1640_v24, 0.0  ;;  %v1645_v37 = vadd.f32 %v3992_v41, %v3639_v11  ;;  %v1647_v45 = vadd.f32 %v3992_v41, %v3644_v22 }
 0x268   : > { %v3987_v31 = vpop.f32.mrf.mxu0  ;;  %v1629_v32 = vpop.f32.mrf.mxu1  ;;  %v1465_v11 = vadd.f32 %v3992_v41, %v3973_v7  ;;  %v2330_v22 = vrot.slane %v3832_v12, 4  ;;  %v2257_v7 = vadd.f32 %v2256_v40, %v3830_v10  ;;  %v2404_v10 = vrot.slane %v3868_v44, 4 }
 0x269   : > { %v2354_v26 = vadd.f32 %v2353_v48, %v2084_v47  ;;  %v1630_v60 = vadd.f32 %v3992_v41, %v1629_v32  ;;  %v1942_v40 = vadd.f32 %v3992_v41, %v3985_v30  ;;  %v4078_v30 = vadd.f32 %v3992_v41, %v3625_v50 }
 0x26b   : > { %v2355_v55 = vadd.f32 %v2354_v26, %v2085_v9  ;;  %v2089_v5 = vmax.f32 %v1630_v60, 0.0  ;;  %v2095_v9 = vmax.f32 %v1645_v37, 0.0  ;;  %v2096_v26 = vmax.f32 %v1647_v45, 0.0 }
 0x26d   : > { %v2356_v2 = vadd.f32 %v2355_v55, %v2086_v54  ;;  %v2022_v55 = vmax.f32 %v1462_v61, 0.0 }
 0x26f   : > { %v4000_v39 = vpop.f32.mrf.mxu2  ;;  %v4002_v46 = vpop.f32.mrf.mxu3  ;;  %v2357_v4 = vadd.f32 %v2356_v2, %v2087_v56  ;;  %v1467_v56 = vadd.f32 %v3992_v41, %v3977_v21  ;;  %v1470_v2 = vadd.f32 %v3992_v41, %v3987_v31  ;;  %v2258_v31 = vrot.slane %v2257_v7, 2 }
 0x270   : > { %v4004_v42 = vpop.f32.mrf.mxu0  ;;  %v1631_v43 = vpop.f32.mrf.mxu1 }
 0x271   : > { %v1632_v3 = vadd.f32 %v3992_v41, %v1631_v43  ;;  %v2358_v13 = vadd.f32 %v2357_v4, %v2088_v59  ;;  %v2094_v43 = vmax.f32 %v1642_v33, 0.0  ;;  %v1472_v21 = vadd.f32 %v3992_v41, %v4004_v42 }
 0x272   : > { %v2259_v42 = vadd.f32 %v2258_v31, %v2257_v7  ;;  %v1780_v7 = vadd.f32 %v3992_v41, %v4000_v39 }
 0x273   : > { %v2090_v14 = vmax.f32 %v1632_v3, 0.0  ;;  %v2359_v15 = vadd.f32 %v2358_v13, %v2089_v5  ;;  %v2331_v3 = vadd.f32 %v2330_v22, %v3832_v12  ;;  %v2282_v5 = vadd.f32 %v3965_v52, %v2022_v55 }
 0x275   : > { %v2360_v25 = vadd.f32 %v2359_v15, %v2090_v14  ;;  %v2025_v14 = vmax.f32 %v1470_v2, 0.0 }
 0x277   : > { %v4011_v63 = vpop.f32.mrf.mxu2  ;;  %v4013_v0 = vpop.f32.mrf.mxu3 }
 0x278   : > { %v1474_v51 = vpop.f32.mrf.mxu0  ;;  %v1634_v1 = vpop.f32.mrf.mxu1  ;;  %v1947_v39 = vadd.f32 %v3992_v41, %v4013_v0 }
 0x279   : > { %v1635_v8 = vadd.f32 %v3992_v41, %v1634_v1  ;;  %v2023_v1 = vmax.f32 %v1465_v11, 0.0  ;;  %v1475_v15 = vadd.f32 %v3992_v41, %v1474_v51 }
 0x27b   : > { %v2091_v16 = vmax.f32 %v1635_v8, 0.0  ;;  %v2024_v8 = vmax.f32 %v1467_v56, 0.0  ;;  %v2283_v13 = vadd.f32 %v2282_v5, %v2023_v1 }
 0x27d   : > { %v2361_v34 = vadd.f32 %v2360_v25, %v2091_v16  ;;  %v2332_v16 = vrot.slane %v2331_v3, 2  ;;  %v2284_v19 = vadd.f32 %v2283_v13, %v2024_v8  ;;  %v2027_v25 = vmax.f32 %v1475_v15, 0.0 }
 0x27e   : > { %v1782_v13 = vadd.f32 %v3992_v41, %v4011_v63 }
 0x27f   : > { %v4017_v17 = vpop.f32.mrf.mxu2  ;;  %v4019_v18 = vpop.f32.mrf.mxu3  ;;  %v2285_v12 = vadd.f32 %v2284_v19, %v2025_v14  ;;  %v2214_v14 = vmax.f32 %v1942_v40, 0.0  ;;  %v2149_v19 = vmax.f32 %v1780_v7, 0.0 }
 0x280   : > { %v1476_v20 = vpop.f32.mrf.mxu0  ;;  %v1636_v23 = vpop.f32.mrf.mxu1  ;;  %v1785_v50 = vadd.f32 %v3992_v41, %v4017_v17  ;;  %v2150_v0 = vmax.f32 %v1782_v13, 0.0 }
 0x281   : > { %v1637_v32 = vadd.f32 %v3992_v41, %v1636_v23  ;;  %v2026_v23 = vmax.f32 %v1472_v21, 0.0  ;;  %v1477_v24 = vadd.f32 %v3992_v41, %v1476_v20  ;;  %v2405_v20 = vadd.f32 %v2404_v10, %v3868_v44 }
 0x283   : > { %v2092_v35 = vmax.f32 %v1637_v32, 0.0  ;;  %v2286_v51 = vadd.f32 %v2285_v12, %v2026_v23  ;;  %v2406_v11 = vrot.slane %v2405_v20, 2 }
 0x285   : > { %v2362_v38 = vadd.f32 %v2361_v34, %v2092_v35  ;;  %v2333_v34 = vadd.f32 %v2332_v16, %v2331_v3  ;;  %v2407_v8 = vadd.f32 %v2406_v11, %v2405_v20 }
 0x287   : > { %v2363_v47 = vadd.f32 %v2362_v38, %v2093_v36  ;;  %v4033_v49 = vpop.f32.mrf.mxu2  ;;  %v4035_v57 = vpop.f32.mrf.mxu3  ;;  %v2028_v36 = vmax.f32 %v1477_v24, 0.0 }
 0x288   : > { %v1479_v48 = vpop.f32.mrf.mxu0 }
 0x289   : > { %v2364_v53 = vadd.f32 %v2363_v47, %v2094_v43  ;;  %v1480_v52 = vadd.f32 %v3992_v41, %v1479_v48  ;;  %v2287_v43 = vadd.f32 %v2286_v51, %v2027_v25  ;;  %v2334_v48 = vrot.slane %v2333_v34, 1 }
 0x28a   : > { %v1950_v25 = vadd.f32 %v3992_v41, %v4019_v18 }
 0x28b   : > { %v2365_v54 = vadd.f32 %v2364_v53, %v2095_v9  ;;  %v2029_v45 = vmax.f32 %v1480_v52, 0.0  ;;  %v2260_v9 = vrot.slane %v2259_v42, 1  ;;  %v2288_v61 = vadd.f32 %v2287_v43, %v2028_v36 }
 0x28c   : > { %v2335_v2 = vadd.f32 %v2334_v48, %v2333_v34  ;;  %v2408_v52 = vrot.slane %v2407_v8, 1  ;;  %v2216_v34 = vmax.f32 %v1947_v39, 0.0 }
 0x28d   : > { %v2366_v60 = vadd.f32 %v2365_v54, %v2096_v26  ;;  %v1777_v54 = vadd.f32 %v3992_v41, %v3983_v29  ;;  %v2289_v22 = vadd.f32 %v2288_v61, %v2029_v45  ;;  %v2261_v1 = vadd.f32 %v2260_v9, %v2259_v42 }
 0x28e   : > { %v4092_v23 = vmul.f32 0.00390625, %v2335_v2  ;;  %v2504_v42 = vadd.f32 %v3981_v28, %v2214_v14  ;;  %v2217_v28 = vmax.f32 %v1950_v25, 0.0  ;;  %v2409_v48 = vadd.f32 %v2408_v52, %v2407_v8 }
 0x28f   : > { %v4047_v58 = vpop.f32.mrf.mxu2  ;;  %v4049_v59 = vpop.f32.mrf.mxu3  ;;  %v2367_v37 = vrot.slane %v2366_v60, 4  ;;  %v2148_v21 = vmax.f32 %v1777_v54, 0.0  ;;  %v4088_v16 = vmul.f32 0.00390625, %v2261_v1 }
 0x290   : > { %v1481_v4 = vpop.f32.mrf.mxu0  ;;  %v1955_v9 = vadd.f32 %v3992_v41, %v4049_v59  ;;  %v2531_v40 = vpack.c.bf16 %v4092_v23, %v4092_v23 }
 0x291   : > { %v1482_v38 = vadd.f32 %v3992_v41, %v1481_v4  ;;  %v2368_v53 = vadd.f32 %v2367_v37, %v2366_v60  ;;  %v1945_v60 = vadd.f32 %v3992_v41, %v4002_v46  ;;  %v4086_v46 = vadd.f32 %v3992_v41, %v3631_v62 }
 0x292   : > { %v2428_v12 = vadd.f32 %v3979_v27, %v2148_v21  ;;  %v1787_v62 = vadd.f32 %v3992_v41, %v4033_v49  ;;  %v2151_v37 = vmax.f32 %v1785_v50, 0.0  ;;  %v1790_v27 = vadd.f32 %v3992_v41, %v4047_v58 }
 0x293   : > { %v2030_v26 = vmax.f32 %v1482_v38, 0.0  ;;  %v2369_v4 = vrot.slane %v2368_v53, 2  ;;  %v2215_v24 = vmax.f32 %v1945_v60, 0.0  ;;  %v1952_v38 = vadd.f32 %v3992_v41, %v4035_v57 }
 0x294   : > { %v2429_v36 = vadd.f32 %v2428_v12, %v2149_v19  ;;  %v2529_v18 = vpack.c.bf16 %v4088_v16, %v4088_v16  ;;  %v2153_v11 = vmax.f32 %v1790_v27, 0.0  ;;  %v2219_v7 = vmax.f32 %v1955_v9, 0.0 }
 0x295   : > { %v2290_v5 = vadd.f32 %v2289_v22, %v2030_v26  ;;  %v2370_v63 = vadd.f32 %v2369_v4, %v2368_v53  ;;  %v2505_v20 = vadd.f32 %v2504_v42, %v2215_v24  ;;  %v2218_v58 = vmax.f32 %v1952_v38, 0.0 }
 0x296   : > { %v2430_v45 = vadd.f32 %v2429_v36, %v2150_v0  ;;  %v2478_v16 = vrot.slane %v3854_v6, 4  ;;  %v2565_v12 = vunpack.c.l.b16 %v2529_v18  ;;  %v2567_v0 = vunpack.c.l.b16 %v2531_v40 }
 0x297   : > { %v4060_v32 = vpop.f32.mrf.mxu2  ;;  %v4062_v33 = vpop.f32.mrf.mxu3  ;;  %v2371_v49 = vrot.slane %v2370_v63, 1  ;;  %v2506_v61 = vadd.f32 %v2505_v20, %v2216_v34 }
 0x298   : > { %v1484_v35 = vpop.f32.mrf.mxu0  ;;  %v1792_v57 = vadd.f32 %v3992_v41, %v4060_v32  ;;  %v2431_v26 = vadd.f32 %v2430_v45, %v2151_v37  ;;  %v1957_v54 = vadd.f32 %v3992_v41, %v4062_v33  ;;  %v2525_v32 = vmul.f32 0.00390625, %v2409_v48 }
 0x299   : > { %v1485_v47 = vadd.f32 %v3992_v41, %v1484_v35  ;;  %v2372_v22 = vadd.f32 %v2371_v49, %v2370_v63  ;;  %v2507_v59 = vadd.f32 %v2506_v61, %v2217_v28 }
 0x29a   : > { %v2154_v60 = vmax.f32 %v1792_v57, 0.0  ;;  %v2220_v13 = vmax.f32 %v1957_v54, 0.0  ;;  %v2533_v23 = vpack.c.bf16 %v2525_v32, %v2525_v32 }
 0x29b   : > { %v2031_v55 = vmax.f32 %v1485_v47, 0.0  ;;  %v2152_v47 = vmax.f32 %v1787_v62, 0.0  ;;  %v2508_v33 = vadd.f32 %v2507_v59, %v2218_v58  ;;  %v2524_v39 = vmul.f32 0.00390625, %v2372_v22 }
 0x29c   : > { %v2569_v37 = vunpack.c.l.b16 %v2533_v23  ;;  %v2159_v58 = vmax.f32 %v4078_v30, 0.0  ;;  %v2160_v22 = vmax.f32 %v4086_v46, 0.0 }
 0x29d   : > { %v2291_v15 = vadd.f32 %v2290_v5, %v2031_v55  ;;  %v2432_v2 = vadd.f32 %v2431_v26, %v2152_v47  ;;  %v2532_v52 = vpack.c.bf16 %v2524_v39, %v2524_v39 }
 0x29f   : > { %v1794_v56 = vpop.f32.mrf.mxu2  ;;  %v1959_v44 = vpop.f32.mrf.mxu3  ;;  %v2433_v21 = vadd.f32 %v2432_v2, %v2153_v11  ;;  %v2568_v28 = vunpack.c.l.b16 %v2532_v52 }
 0x2a0   : > { %v1486_v3 = vpop.f32.mrf.mxu0  ;;  %v1795_v55 = vadd.f32 %v3992_v41, %v1794_v56 }
 0x2a1   : > { %v1487_v29 = vadd.f32 %v3992_v41, %v1486_v3  ;;  %v1960_v3 = vadd.f32 %v3992_v41, %v1959_v44  ;;  %v2509_v44 = vadd.f32 %v2508_v33, %v2219_v7  ;;  %v2434_v24 = vadd.f32 %v2433_v21, %v2154_v60 }
 0x2a2   : > { %v2155_v56 = vmax.f32 %v1795_v55, 0.0 }
 0x2a3   : > { %v2032_v31 = vmax.f32 %v1487_v29, 0.0  ;;  %v2221_v19 = vmax.f32 %v1960_v3, 0.0  ;;  %v2510_v25 = vadd.f32 %v2509_v44, %v2220_v13 }
 0x2a4   : > { %v2435_v42 = vadd.f32 %v2434_v24, %v2155_v56 }
 0x2a5   : > { %v2292_v10 = vadd.f32 %v2291_v15, %v2032_v31 }
 0x2a7   : > { %v2293_v35 = vrot.slane %v2292_v10, 4  ;;  %v1796_v17 = vpop.f32.mrf.mxu2  ;;  %v1961_v51 = vpop.f32.mrf.mxu3 }
 0x2a8   : > { %v1797_v5 = vadd.f32 %v3992_v41, %v1796_v17  ;;  %v1962_v14 = vadd.f32 %v3992_v41, %v1961_v51  ;;  %v2479_v17 = vadd.f32 %v2478_v16, %v3854_v6  ;;  %v2511_v51 = vadd.f32 %v2510_v25, %v2221_v19 }
 0x2a9   : > { %v2294_v43 = vadd.f32 %v2293_v35, %v2292_v10 }
 0x2aa   : > { %v2156_v10 = vmax.f32 %v1797_v5, 0.0  ;;  %v2222_v62 = vmax.f32 %v1962_v14, 0.0 }
 0x2ab   : > { %v2295_v53 = vrot.slane %v2294_v43, 2 }
 0x2ac   : > { %v2436_v27 = vadd.f32 %v2435_v42, %v2156_v10  ;;  %v2650_v10 = vlaneseq }
 0x2ad   : > { %v2296_v1 = vadd.f32 %v2295_v53, %v2294_v43  ;;  %v2512_v43 = vadd.f32 %v2511_v51, %v2222_v62  ;;  %v2480_v53 = vrot.slane %v2479_v17, 2 }
 0x2af   : > { %v2297_v4 = vrot.slane %v2296_v1, 1  ;;  %v1799_v29 = vpop.f32.mrf.mxu2  ;;  %v1964_v8 = vpop.f32.mrf.mxu3 }
 0x2b0   : > { %v1800_v31 = vadd.f32 %v3992_v41, %v1799_v29  ;;  %v1965_v50 = vadd.f32 %v3992_v41, %v1964_v8 }
 0x2b1   : > { %v2298_v15 = vadd.f32 %v2297_v4, %v2296_v1  ;;  %v2481_v1 = vadd.f32 %v2480_v53, %v2479_v17 }
 0x2b2   : > { %v2157_v35 = vmax.f32 %v1800_v31, 0.0  ;;  %v2223_v36 = vmax.f32 %v1965_v50, 0.0 }
 0x2b3   : > { %v2522_v63 = vmul.f32 0.00390625, %v2298_v15  ;;  %v2482_v32 = vrot.slane %v2481_v1, 1 }
 0x2b4   : > { %v2437_v9 = vadd.f32 %v2436_v27, %v2157_v35  ;;  %v2513_v48 = vadd.f32 %v2512_v43, %v2223_v36 }
 0x2b5   : > { %v2530_v34 = vpack.c.bf16 %v2522_v63, %v2522_v63  ;;  %v2483_v8 = vadd.f32 %v2482_v32, %v2481_v1 }
 0x2b7   : > { %v2566_v38 = vunpack.c.l.b16 %v2530_v34  ;;  %v1801_v20 = vpop.f32.mrf.mxu2  ;;  %v1966_v49 = vpop.f32.mrf.mxu3  ;;  %v2527_v13 = vmul.f32 0.00390625, %v2483_v8 }
 0x2b8   : > { %v1802_v18 = vadd.f32 %v3992_v41, %v1801_v20  ;;  %v1967_v45 = vadd.f32 %v3992_v41, %v1966_v49 }
 0x2b9   : > { %v2574_v47 = vsel %vm2573_vm0, %v2566_v38, %v2565_v12  ;;  %v2535_v56 = vpack.c.bf16 %v2527_v13, %v2527_v13  ;;  %v2651_v12 = vand.u32 127, %v2650_v10 }
 0x2ba   : > { %v2576_v6 = vsel %vm2575_vm1, %v2567_v0, %v2574_v47  ;;  %v2158_v61 = vmax.f32 %v1802_v18, 0.0  ;;  %v2224_v57 = vmax.f32 %v1967_v45, 0.0  ;;  %v3495_v0 = vld [vmem:[%s4141_s4] ss:$0 sm:$0xff] }
 0x2bb   : > { %v2578_v26 = vsel %vm2577_vm2, %v2568_v28, %v2576_v6  ;;  %v2571_v44 = vunpack.c.l.b16 %v2535_v56  ;;  %vm2652_vm7 = vcmp.lt.s32.totalorder %v2651_v12, 5 }
 0x2bc   : > { %v2438_v11 = vadd.f32 %v2437_v9, %v2158_v61  ;;  %v2514_v54 = vadd.f32 %v2513_v48, %v2224_v57  ;;  %v2580_v40 = vsel %vm2579_vm3, %v2569_v37, %v2578_v26 }
 0x2be   : > { %v2439_v55 = vadd.f32 %v2438_v11, %v2159_v58  ;;  %v2515_v41 = vrot.slane %v2514_v54, 4 }
 0x2c0   : > { %v2440_v59 = vadd.f32 %v2439_v55, %v2160_v22  ;;  %v2516_v2 = vadd.f32 %v2515_v41, %v2514_v54 }
 0x2c2   : > { %v2441_v7 = vrot.slane %v2440_v59, 4  ;;  %v2517_v3 = vrot.slane %v2516_v2, 2 }
 0x2c4   : > { %v2442_v60 = vadd.f32 %v2441_v7, %v2440_v59  ;;  %v2518_v4 = vadd.f32 %v2517_v3, %v2516_v2 }
 0x2c6   : > { %v2443_v5 = vrot.slane %v2442_v60, 2  ;;  %v2519_v29 = vrot.slane %v2518_v4, 1 }
 0x2c8   : > { %v2444_v33 = vadd.f32 %v2443_v5, %v2442_v60  ;;  %v2520_v30 = vadd.f32 %v2519_v29, %v2518_v4 }
 0x2ca   : > { %v2445_v21 = vrot.slane %v2444_v33, 1  ;;  %v2528_v39 = vmul.f32 0.00390625, %v2520_v30 }
 0x2cc   : > { %v2446_v14 = vadd.f32 %v2445_v21, %v2444_v33  ;;  %v2536_v31 = vpack.c.bf16 %v2528_v39, %v2528_v39 }
 0x2ce   : > { %v2526_v46 = vmul.f32 0.00390625, %v2446_v14  ;;  %v2572_v19 = vunpack.c.l.b16 %v2536_v31 }
 0x2d0   : > { %v2534_v15 = vpack.c.bf16 %v2526_v46, %v2526_v46 }
 0x2d2   : > { %v2570_v16 = vunpack.c.l.b16 %v2534_v15 }
 0x2d4   : > { %v2582_v50 = vsel %vm2581_vm4, %v2570_v16, %v2580_v40 }
 0x2d5   : > { %v2584_v23 = vsel %vm2583_vm5, %v2571_v44, %v2582_v50 }
 0x2d6   : > { %v2586_v24 = vsel %vm2585_vm6, %v2572_v19, %v2584_v23 }
 0x2d7   : > { %v2587_v63 = vpack.c.b16 %v2586_v24, %v2586_v24 }
 0x2d9   : > { %2645 = vmatmul.bf16.vlgmr.msrb.gmra.mxu1 %v2587_v63 }
 0x356   : > { %v2646_v25 = vpop.f32.mrf.mxu1 }
 0x357   : > { %v2647_v62 = vadd.f32 %v3495_v0, %v2646_v25 }
 0x359   : > { %v2653_v52 = vsel %vm2652_vm7, %v2647_v62, -1e+30 }
 0x35a   : > { %2654 = vmax.xlane.f32.xlu0 %v2653_v52 }
 0x35e   : > { %v2648_v42 = vpop.f32.mrf.mxu1 }
 0x3cd   : > { %v2655_v34 = vpop.xlane.xlu0 %2654 }
 0x3ce   : > { %v2656_v35 = vsub.f32 %v2653_v52, %v2655_v34 }
 0x3d0   : > { %v2657_v17 = vmul.f32 1.442695, %v2656_v35 }
 0x3d2   : > { %3496 = vpow2.f32 %v2657_v17 }
 0x3d8   : > { %v3497_v51 = vpop.eup %3496 }
 0x3d9   : > { %2659 = vadd.xlane.f32.xlu0 %v3497_v51 }
 0x44c   : > { %v2660_v36 = vpop.xlane.xlu0 %2659 }
 0x44d   : > { %3498 = vrcp.f32 %v2660_v36  ;;  %v2672_v20 = vand.u32 2147483648, %v2660_v36  ;;  %v2670_v43 = vand.u32 2147483647, %v2660_v36  ;;  %vm2666_vm9 = vweird.f32 %v2660_v36 }
 0x44f   : > { %v2673_v45 = vor.u32 1.1754944e-38, %v2672_v20  ;;  %vm2671_vm11 = vcmp.eq.f32.partialorder %v2670_v43, 8.507059e+37 }
 0x453   : > { %v3499_v37 = vpop.eup %3498 }
 0x454   : > { %v2662_v38 = vmul.f32 %v3499_v37, %v2660_v36  ;;  %vm2667_vm8 = vweird.f32 %v3499_v37 }
 0x455   : > { %vm2668_vm10 = vmor %vm2666_vm9, %vm2667_vm8 }
 0x456   : > { %v2663_v27 = vsub.f32 1.0, %v2662_v38 }
 0x458   : > { %v2664_v49 = vmul.f32 %v3499_v37, %v2663_v27 }
 0x45a   : > { %v2665_v18 = vadd.f32 %v3499_v37, %v2664_v49 }
 0x45c   : > { %v2669_v28 = vsel %vm2668_vm10, %v3499_v37, %v2665_v18 }
 0x45d   : > { %v2674_v47 = vsel %vm2671_vm11, %v2673_v45, %v2669_v28 }
 0x45e   : > { %v2675_v9 = vmul.f32 %v3497_v51, %v2674_v47 }
 0x460   : > { %2676 = vst [vmem:[%s227_s22] sm:$0xff] %v2675_v9 }
 0x461 PF: > { %s15_s18 = sadd.s32 1, %s3508_s18  }
 0x462   : > { %p12_p5 = scmp.ge.s32.totalorder %s15_s18, 4  }
 0x464   :  { %14 = sbr.rel (!%p12_p5) target bundleno = 1 (0x1), region = 70 }

</bundles_post_ra>
